<compile_context>
chip_gen: v7x
topology: tpu7x:2x2x1
jax: 0.10.0
libtpu: 0.0.40
codegen_flags: <defaults>
</compile_context>

<pallas_src>
import jax
import jax.numpy as jnp
from jax.experimental import pallas as pl
from jax.experimental.pallas import tpu as pltpu


def _head_kernel(feat_ref, w1m_ref, w1a_ref, b1_ref, w2_ref, b2_ref,
                 out_ref, max_acc, sum_acc):
    """Grid axis 0 walks lane-dense chunks of the flattened spatial axis.

    feat_ref : (B, C, S_chunk) encoder-feature chunk (bf16 or f32).
    max_acc / sum_acc : (B, C) f32 running pooling accumulators (VMEM scratch).
    """
    s = pl.program_id(0)
    last = pl.num_programs(0) - 1

    # Reduce this chunk.  Keep the reduce in f32 (v5e VPU has no bf16 path);
    # max is exact and sum accumulates exactly in f32.
    f = feat_ref[...].astype(jnp.float32)            # (B, C, S_chunk)
    blk_max = jnp.max(f, axis=-1)                    # (B, C)
    blk_sum = jnp.sum(f, axis=-1)                    # (B, C)

    @pl.when(s == 0)
    def _init():
        max_acc[...] = blk_max
        sum_acc[...] = blk_sum

    @pl.when(s > 0)
    def _accumulate():
        max_acc[...] = jnp.maximum(max_acc[...], blk_max)
        sum_acc[...] = sum_acc[...] + blk_sum

    @pl.when(s == last)
    def _finalize():
        # AdaptiveConcatPool2d + flatten: cat([max, avg], 1).  The 1/S avg
        # scale is pre-folded into w1a, so the raw running sum is used.
        mx = max_acc[...].astype(jnp.bfloat16)
        sm = sum_acc[...].astype(jnp.bfloat16)

        # linear_1: cat([max, avg], 1) @ W1 == max @ W1[:C] + avg @ W1[C:]
        # (two bf16 MXU dots with f32 accumulation; avoids the lane concat).
        h = (jnp.dot(mx, w1m_ref[...], preferred_element_type=jnp.float32)
             + jnp.dot(sm, w1a_ref[...], preferred_element_type=jnp.float32)
             + b1_ref[...])

        # Mish(x) = x * tanh(softplus(x)); softplus threshold=20 as in PyTorch.
        sp = jnp.where(h > 20.0, h, jnp.log1p(jnp.exp(jnp.minimum(h, 20.0))))
        h = h * jnp.tanh(sp)

        # BatchNorm1d (eval) is folded into w2/b2; Dropout(0.5) eval: identity.
        out = (jnp.dot(h.astype(jnp.bfloat16), w2_ref[...],
                       preferred_element_type=jnp.float32) + b2_ref[...])
        out_ref[...] = out.astype(out_ref.dtype)


def _const_spec(a):
    """Full-array block with a constant index_map -> DMA'd once, kept resident."""
    zeros = (0,) * a.ndim
    return pl.BlockSpec(a.shape, lambda s, _z=zeros: _z)


def _num_reduce_steps(B, C, S, itemsize, block_budget_bytes=4 << 20):
    """Smallest step count >= 2 (keeps feature DMA overlapped with weight DMAs)
    whose lane-dense (multiple-of-128) chunk of S fits the per-block budget."""
    for steps in range(2, S + 1):
        chunk = S // steps
        if S % steps or chunk % 128:
            continue
        if B * C * chunk * itemsize <= block_budget_bytes:
            return steps
    return 1   # fall back to one full-S block (full-extent dim: still valid tiling)


def net_head_pallas(feat_bcs, params):
    """feat_bcs: (B, C, S) encoder features — the module's pooling input with its
    spatial dims flattened (bf16 or f32)."""
    B, C, S = feat_bcs.shape
    hidden = params["w1"].shape[1]
    n_classes = params["w2"].shape[1]
    n_pad = 128 * pl.cdiv(n_classes, 128)            # lane-dense output width

    # ---- parameter folding (f32 math, weights then cast to bf16) ------------
    # linear_1 split: rows [:C] hit the max-pool half, rows [C:] the avg-pool
    # half (torch.cat([mp, ap], 1) ordering); 1/S avg-pool scale folded in.
    w1 = params["w1"].astype(jnp.float32)
    w1m = w1[:C].astype(jnp.bfloat16)
    w1a = (w1[C:] * (1.0 / float(S))).astype(jnp.bfloat16)
    b1 = params["b1"].astype(jnp.float32)

    # Eval BatchNorm1d folded into linear_2:
    #   bn(h) = h*a + c,  a = gamma*rsqrt(var+eps),  c = beta - mean*a
    #   bn(h) @ W2 + b2 = h @ (a[:,None] * W2) + (c @ W2 + b2)
    a = params["gamma"] * jax.lax.rsqrt(params["rvar"] + 1e-5)   # (1, hidden)
    c = params["beta"] - params["rmean"] * a                      # (1, hidden)
    w2f = a.reshape(hidden, 1) * params["w2"]                     # (hidden, n_cls)
    b2f = params["b2"] + c @ params["w2"]                         # (1, n_cls)

    # Pad linear_2 to the lane-dense width (unmasked stores); wrapper slices.
    w2p = jnp.zeros((hidden, n_pad), jnp.bfloat16).at[:, :n_classes].set(
        w2f.astype(jnp.bfloat16))
    b2p = jnp.zeros((1, n_pad), jnp.float32).at[:, :n_classes].set(b2f)

    steps = _num_reduce_steps(B, C, S, feat_bcs.dtype.itemsize)
    chunk = S // steps

    in_specs = [
        # One lane-dense spatial chunk per grid step; the reduction axis is the
        # grid, so Pallas double-buffers the feature DMA under the reduce.
        pl.BlockSpec((B, C, chunk), lambda s: (0, 0, s)),
        _const_spec(w1m), _const_spec(w1a), _const_spec(b1),
        _const_spec(w2p), _const_spec(b2p),
    ]

    feat_bytes = feat_bcs.size * feat_bcs.dtype.itemsize
    param_bytes = sum(x.size * x.dtype.itemsize for x in (w1m, w1a, b1, w2p, b2p))
    cost = pl.CostEstimate(
        flops=2 * feat_bcs.size + 2 * B * (2 * C * hidden + hidden * n_pad),
        transcendentals=3 * B * hidden,
        bytes_accessed=feat_bytes + param_bytes + B * n_pad * 4,
    )

    out = pl.pallas_call(
        _head_kernel,
        out_shape=jax.ShapeDtypeStruct((B, n_pad), jnp.float32),
        grid_spec=pltpu.PrefetchScalarGridSpec(
            num_scalar_prefetch=0,
            grid=(steps,),
            in_specs=in_specs,
            out_specs=pl.BlockSpec((B, n_pad), lambda s: (0, 0)),
            scratch_shapes=[pltpu.VMEM((B, C), jnp.float32),   # running max
                            pltpu.VMEM((B, C), jnp.float32)],  # running sum
        ),
        compiler_params=pltpu.CompilerParams(
            dimension_semantics=("arbitrary",),       # pooling reduction axis
            vmem_limit_bytes=32 * 1024 * 1024,        # fits v5e/v6e/v7x scoped VMEM
        ),
        cost_estimate=cost,
    )(feat_bcs, w1m, w1a, b1, w2p, b2p)

    return out[:, :n_classes]


@jax.jit
def net_forward(feat_maps, params):
    """Mirrors Net.forward from the AdaptiveConcatPool2d input onwards.

    feat_maps: (B, C, H, W) encoder feature maps AFTER the module's
    view/permute/view tile stitch (H = Hf * n_tiles) — exactly the tensor the
    PyTorch module feeds to AdaptiveConcatPool2d.  Global max/avg pooling only
    needs the spatial dims flattened, which is a free (contiguous) reshape.
    """
    B, C, H, W = feat_maps.shape
    return net_head_pallas(feat_maps.reshape(B, C, H * W), params)


def make_params(key, nc, hidden, n_classes):
    ks = jax.random.split(key, 6)
    s1 = 1.0 / jnp.sqrt(2.0 * nc)
    s2 = 1.0 / jnp.sqrt(float(hidden))
    return {
        # Linear(2*nc, 512): stored as (in, out) so the head does x @ W + b.
        # Rows [:nc] multiply the max-pooled half, rows [nc:] the avg-pooled half.
        "w1": jax.random.uniform(ks[0], (2 * nc, hidden), jnp.float32, -s1, s1),
        "b1": jax.random.uniform(ks[1], (1, hidden), jnp.float32, -s1, s1),
        # BatchNorm1d(512) affine + running stats (deterministic, non-trivial)
        "gamma": 1.0 + 0.1 * jax.random.normal(ks[2], (1, hidden), jnp.float32),
        "beta": 0.1 * jax.random.normal(ks[3], (1, hidden), jnp.float32),
        "rmean": 0.05 * jax.random.normal(ks[4], (1, hidden), jnp.float32),
        "rvar": jnp.ones((1, hidden), jnp.float32),
        # Linear(512, n_classes)
        "w2": jax.random.uniform(ks[5], (hidden, n_classes), jnp.float32, -s2, s2),
        "b2": jnp.zeros((1, n_classes), jnp.float32),
    }


if __name__ == "__main__":
    key = jax.random.PRNGKey(0)
    k_feat, k_par = jax.random.split(key)

    # Small shapes consistent with the module's forward: n_tiles encoder tiles of
    # Hf x Wf stitched along H, nc channels (stand-in for 2048), hidden=512
    # (fixed by the module), n_classes=6 (module default n=6).
    n_tiles, B, nc, Hf, Wf = 4, 2, 128, 8, 8
    hidden, n_classes = 512, 6

    # Memory-bound feature slab fed as bf16; kernel upcasts to f32 to reduce.
    feat = jax.random.normal(
        k_feat, (B, nc, Hf * n_tiles, Wf), jnp.float32).astype(jnp.bfloat16)
    params = make_params(k_par, nc, hidden, n_classes)

    out = net_forward(feat, params)
    jax.block_until_ready(out)
    assert out.shape == (B, n_classes), out.shape

    # Unfused f32 reference of the same head (tolerance covers the kernel's
    # bf16 weight/activation storage; accumulation is f32 in both paths).
    f32 = feat.astype(jnp.float32)
    mx = f32.max(axis=(2, 3))
    av = f32.mean(axis=(2, 3))
    x = jnp.concatenate([mx, av], axis=1)
    h = x @ params["w1"] + params["b1"]
    sp = jnp.where(h > 20.0, h, jnp.log1p(jnp.exp(jnp.minimum(h, 20.0))))
    h = h * jnp.tanh(sp)
    h = (h - params["rmean"]) * jax.lax.rsqrt(params["rvar"] + 1e-5)
    h = h * params["gamma"] + params["beta"]
    ref = h @ params["w2"] + params["b2"]
    assert jnp.allclose(out, ref, atol=5e-2), float(jnp.max(jnp.abs(out - ref)))

    print("KERNEL_OK")
</pallas_src>

<mosaic_0001>
module attributes {stable_mosaic.version = 11 : i64} {
  func.func @_head_kernel(%arg0: i32, %arg1: memref<2x128x128xbf16, #tpu.memory_space<vmem>>, %arg2: memref<128x512xbf16, #tpu.memory_space<vmem>>, %arg3: memref<128x512xbf16, #tpu.memory_space<vmem>>, %arg4: memref<1x512xf32, #tpu.memory_space<vmem>>, %arg5: memref<512x128xbf16, #tpu.memory_space<vmem>>, %arg6: memref<1x128xf32, #tpu.memory_space<vmem>>, %arg7: memref<2x128xf32, #tpu.memory_space<vmem>>, %arg8: memref<2x128xf32, #tpu.memory_space<vmem>>, %arg9: memref<2x128xf32, #tpu.memory_space<vmem>>) attributes {dimension_semantics = [#tpu.dimension_semantics<arbitrary>], iteration_bounds = array<i64: 2>, scalar_prefetch = 0 : i64, scratch_operands = 2 : i64, tpu.core_type = #tpu.core_type<tc>, window_params = [{transform_indices = @transform_0, window_bounds = array<i64: 2, 128, 128>}, {pipeline_mode = #tpu.pipeline_mode<synchronous>, transform_indices = @transform_1, window_bounds = array<i64: 128, 512>}, {pipeline_mode = #tpu.pipeline_mode<synchronous>, transform_indices = @transform_2, window_bounds = array<i64: 128, 512>}, {pipeline_mode = #tpu.pipeline_mode<synchronous>, transform_indices = @transform_3, window_bounds = array<i64: 1, 512>}, {pipeline_mode = #tpu.pipeline_mode<synchronous>, transform_indices = @transform_4, window_bounds = array<i64: 512, 128>}, {pipeline_mode = #tpu.pipeline_mode<synchronous>, transform_indices = @transform_5, window_bounds = array<i64: 1, 128>}, {pipeline_mode = #tpu.pipeline_mode<synchronous>, transform_indices = @transform_6, window_bounds = array<i64: 2, 128>}]} {
    %c0 = arith.constant 0 : index
    %c0_0 = arith.constant 0 : index
    %c0_1 = arith.constant 0 : index
    %0 = vector.load %arg1[%c0, %c0_0, %c0_1] : memref<2x128x128xbf16, #tpu.memory_space<vmem>>, vector<2x128x128xbf16>
    %1 = arith.extf %0 : vector<2x128x128xbf16> to vector<2x128x128xf32>
    %cst = arith.constant dense<0xFF800000> : vector<2x128xf32>
    %2 = vector.multi_reduction <maximumf>, %1, %cst [2] : vector<2x128x128xf32> to vector<2x128xf32>
    %cst_2 = arith.constant dense<0.000000e+00> : vector<2x128xf32>
    %3 = vector.multi_reduction <add>, %1, %cst_2 [2] : vector<2x128x128xf32> to vector<2x128xf32>
    %c0_i32 = arith.constant 0 : i32
    %4 = arith.cmpi eq, %arg0, %c0_i32 : i32
    %5 = arith.extui %4 : i1 to i32
    %c0_i32_3 = arith.constant 0 : i32
    %6 = arith.cmpi ne, %5, %c0_i32_3 : i32
    scf.if %6 {
      %c0_7 = arith.constant 0 : index
      %c0_8 = arith.constant 0 : index
      %13 = vector.load %arg8[%c0_7, %c0_8] : memref<2x128xf32, #tpu.memory_space<vmem>>, vector<2x128xf32>
      tpu.vector_store %arg8[%c0_7, %c0_8], %2 {strides = array<i32>} : memref<2x128xf32, #tpu.memory_space<vmem>>, vector<2x128xf32>,
      %c0_9 = arith.constant 0 : index
      %c0_10 = arith.constant 0 : index
      %14 = vector.load %arg9[%c0_9, %c0_10] : memref<2x128xf32, #tpu.memory_space<vmem>>, vector<2x128xf32>
      tpu.vector_store %arg9[%c0_9, %c0_10], %3 {strides = array<i32>} : memref<2x128xf32, #tpu.memory_space<vmem>>, vector<2x128xf32>,
    } else {
    }
    %c0_i32_4 = arith.constant 0 : i32
    %7 = arith.cmpi sgt, %arg0, %c0_i32_4 : i32
    %8 = arith.extui %7 : i1 to i32
    %c0_i32_5 = arith.constant 0 : i32
    %9 = arith.cmpi ne, %8, %c0_i32_5 : i32
    scf.if %9 {
      %c0_7 = arith.constant 0 : index
      %c0_8 = arith.constant 0 : index
      %13 = vector.load %arg8[%c0_7, %c0_8] : memref<2x128xf32, #tpu.memory_space<vmem>>, vector<2x128xf32>
      %14 = arith.maximumf %13, %2 : vector<2x128xf32>
      %c0_9 = arith.constant 0 : index
      %c0_10 = arith.constant 0 : index
      %15 = vector.load %arg8[%c0_9, %c0_10] : memref<2x128xf32, #tpu.memory_space<vmem>>, vector<2x128xf32>
      tpu.vector_store %arg8[%c0_9, %c0_10], %14 {strides = array<i32>} : memref<2x128xf32, #tpu.memory_space<vmem>>, vector<2x128xf32>,
      %c0_11 = arith.constant 0 : index
      %c0_12 = arith.constant 0 : index
      %16 = vector.load %arg9[%c0_11, %c0_12] : memref<2x128xf32, #tpu.memory_space<vmem>>, vector<2x128xf32>
      %17 = arith.addf %16, %3 : vector<2x128xf32>
      %c0_13 = arith.constant 0 : index
      %c0_14 = arith.constant 0 : index
      %18 = vector.load %arg9[%c0_13, %c0_14] : memref<2x128xf32, #tpu.memory_space<vmem>>, vector<2x128xf32>
      tpu.vector_store %arg9[%c0_13, %c0_14], %17 {strides = array<i32>} : memref<2x128xf32, #tpu.memory_space<vmem>>, vector<2x128xf32>,
    } else {
    }
    %c1_i32 = arith.constant 1 : i32
    %10 = arith.cmpi eq, %arg0, %c1_i32 : i32
    %11 = arith.extui %10 : i1 to i32
    %c0_i32_6 = arith.constant 0 : i32
    %12 = arith.cmpi ne, %11, %c0_i32_6 : i32
    scf.if %12 {
      %c0_7 = arith.constant 0 : index
      %c0_8 = arith.constant 0 : index
      %13 = vector.load %arg8[%c0_7, %c0_8] : memref<2x128xf32, #tpu.memory_space<vmem>>, vector<2x128xf32>
      %14 = arith.truncf %13 : vector<2x128xf32> to vector<2x128xbf16>
      %c0_9 = arith.constant 0 : index
      %c0_10 = arith.constant 0 : index
      %15 = vector.load %arg9[%c0_9, %c0_10] : memref<2x128xf32, #tpu.memory_space<vmem>>, vector<2x128xf32>
      %16 = arith.truncf %15 : vector<2x128xf32> to vector<2x128xbf16>
      %c0_11 = arith.constant 0 : index
      %c0_12 = arith.constant 0 : index
      %17 = vector.load %arg2[%c0_11, %c0_12] : memref<128x512xbf16, #tpu.memory_space<vmem>>, vector<128x512xbf16>
      %cst_13 = arith.constant dense<0.000000e+00> : vector<2x512xf32>
      %18 = tpu.matmul %14, %17, %cst_13 {dimension_numbers = #tpu.dot_dimension_numbers<[1], [0], [0], [1], [0, 0, 1, 1], [], []>} : vector<2x128xbf16>, vector<128x512xbf16>, vector<2x512xf32> -> vector<2x512xf32>
      %c0_14 = arith.constant 0 : index
      %c0_15 = arith.constant 0 : index
      %19 = vector.load %arg3[%c0_14, %c0_15] : memref<128x512xbf16, #tpu.memory_space<vmem>>, vector<128x512xbf16>
      %cst_16 = arith.constant dense<0.000000e+00> : vector<2x512xf32>
      %20 = tpu.matmul %16, %19, %cst_16 {dimension_numbers = #tpu.dot_dimension_numbers<[1], [0], [0], [1], [0, 0, 1, 1], [], []>} : vector<2x128xbf16>, vector<128x512xbf16>, vector<2x512xf32> -> vector<2x512xf32>
      %21 = arith.addf %18, %20 : vector<2x512xf32>
      %c0_17 = arith.constant 0 : index
      %c0_18 = arith.constant 0 : index
      %22 = vector.load %arg4[%c0_17, %c0_18] : memref<1x512xf32, #tpu.memory_space<vmem>>, vector<1x512xf32>
      %23 = vector.broadcast %22 : vector<1x512xf32> to vector<2x512xf32>
      %24 = arith.addf %21, %23 : vector<2x512xf32>
      %cst_19 = arith.constant 2.000000e+01 : f32
      %25 = vector.broadcast %cst_19 : f32 to vector<2x512xf32>
      %26 = arith.cmpf ogt, %24, %25 : vector<2x512xf32>
      %cst_20 = arith.constant 2.000000e+01 : f32
      %27 = vector.broadcast %cst_20 : f32 to vector<2x512xf32>
      %28 = arith.minimumf %24, %27 : vector<2x512xf32>
      %29 = math.exp %28 : vector<2x512xf32>
      %30 = math.log1p %29 : vector<2x512xf32>
      %31 = arith.select %26, %24, %30 : vector<2x512xi1>, vector<2x512xf32>
      %32 = math.tanh %31 : vector<2x512xf32>
      %33 = arith.mulf %24, %32 : vector<2x512xf32>
      %34 = arith.truncf %33 : vector<2x512xf32> to vector<2x512xbf16>
      %c0_21 = arith.constant 0 : index
      %c0_22 = arith.constant 0 : index
      %35 = vector.load %arg5[%c0_21, %c0_22] : memref<512x128xbf16, #tpu.memory_space<vmem>>, vector<512x128xbf16>
      %cst_23 = arith.constant dense<0.000000e+00> : vector<2x128xf32>
      %36 = tpu.matmul %34, %35, %cst_23 {dimension_numbers = #tpu.dot_dimension_numbers<[1], [0], [0], [1], [0, 0, 1, 1], [], []>} : vector<2x512xbf16>, vector<512x128xbf16>, vector<2x128xf32> -> vector<2x128xf32>
      %c0_24 = arith.constant 0 : index
      %c0_25 = arith.constant 0 : index
      %37 = vector.load %arg6[%c0_24, %c0_25] : memref<1x128xf32, #tpu.memory_space<vmem>>, vector<1x128xf32>
      %38 = vector.broadcast %37 : vector<1x128xf32> to vector<2x128xf32>
      %39 = arith.addf %36, %38 : vector<2x128xf32>
      %c0_26 = arith.constant 0 : index
      %c0_27 = arith.constant 0 : index
      %40 = vector.load %arg7[%c0_26, %c0_27] : memref<2x128xf32, #tpu.memory_space<vmem>>, vector<2x128xf32>
      tpu.vector_store %arg7[%c0_26, %c0_27], %39 {strides = array<i32>} : memref<2x128xf32, #tpu.memory_space<vmem>>, vector<2x128xf32>,
    } else {
    }
    return
  }
  func.func @transform_0(%arg0: i32) -> (i32, i32, i32) {
    %c0_i32 = arith.constant 0 : i32
    %c0_i32_0 = arith.constant 0 : i32
    %c0_i32_1 = arith.constant 0 : i32
    return %c0_i32, %c0_i32_0, %arg0 : i32, i32, i32
  }
  func.func @transform_1(%arg0: i32) -> (i32, i32) {
    %c0_i32 = arith.constant 0 : i32
    %c0_i32_0 = arith.constant 0 : i32
    %c0_i32_1 = arith.constant 0 : i32
    return %c0_i32, %c0_i32_0 : i32, i32
  }
  func.func @transform_2(%arg0: i32) -> (i32, i32) {
    %c0_i32 = arith.constant 0 : i32
    %c0_i32_0 = arith.constant 0 : i32
    %c0_i32_1 = arith.constant 0 : i32
    return %c0_i32, %c0_i32_0 : i32, i32
  }
  func.func @transform_3(%arg0: i32) -> (i32, i32) {
    %c0_i32 = arith.constant 0 : i32
    %c0_i32_0 = arith.constant 0 : i32
    %c0_i32_1 = arith.constant 0 : i32
    return %c0_i32, %c0_i32_0 : i32, i32
  }
  func.func @transform_4(%arg0: i32) -> (i32, i32) {
    %c0_i32 = arith.constant 0 : i32
    %c0_i32_0 = arith.constant 0 : i32
    %c0_i32_1 = arith.constant 0 : i32
    return %c0_i32, %c0_i32_0 : i32, i32
  }
  func.func @transform_5(%arg0: i32) -> (i32, i32) {
    %c0_i32 = arith.constant 0 : i32
    %c0_i32_0 = arith.constant 0 : i32
    %c0_i32_1 = arith.constant 0 : i32
    return %c0_i32, %c0_i32_0 : i32, i32
  }
  func.func @transform_6(%arg0: i32) -> (i32, i32) {
    %c0_i32 = arith.constant 0 : i32
    %c0_i32_0 = arith.constant 0 : i32
    %c0_i32_1 = arith.constant 0 : i32
    return %c0_i32, %c0_i32_0 : i32, i32
  }
}

</mosaic_0001>

<bundles_post_ra>
// kernel: net_forward.1
= control target key start
LH: loop header
LB: loop body
LE: loop exit
PB: predicated region body
PF: predicated region fallthrough
CT: control target
= control target key end

     0   :  { %11 = vsyncpa [#allocation6], 0  ;;  %s3001_s21 = smov 0   ;;  %s3003_s22 = smov 0   ;;  %s4210_s0 = inlined_call_operand.vmem [shape: bf16[2,128,256], index: 0, kind: input, shape index: {}]   ;;  %s4211_s1 = inlined_call_operand.vmem [shape: bf16[128,512], index: 1, kind: input, shape index: {}]   ;;  %s4212_s2 = inlined_call_operand.vmem [shape: bf16[128,512], index: 2, kind: input, shape index: {}]   ;;  %s4213_s3 = inlined_call_operand.vmem [shape: f32[1,512], index: 3, kind: input, shape index: {}]   ;;  %s4214_s4 = inlined_call_operand.vmem [shape: bf16[512,128], index: 4, kind: input, shape index: {}]   ;;  %s4215_s5 = inlined_call_operand.vmem [shape: f32[1,128], index: 5, kind: input, shape index: {}]   ;;  %s4216_s6 = inlined_call_operand.hbm [shape: f32[2,128], index: 6, kind: output, shape index: {}]  }
   0x1   :  { %s3005_s23 = smov 0  }
   0x2 LB: > { %s3017_s24 = sadd.s32 4294967295, %s2962_s23   ;;  %s3020_s25 = sadd.s32 1, %s2962_s23   ;;  %s2962_s23 = sphi %s3005_s23, %s4336_s23   ;;  %s2958_s22 = sphi %s3003_s22, %s4335_s22   ;;  %s2954_s21 = sphi %s3001_s21, %s4334_s21  }
   0x3   : > { %s21_s26 = ssub.s32 %s2962_s23, %s3020_s25  ;;  %s24_s27 = sadd.s32 1, %s2958_s22 }
   0x4   : > { %p22_p0 = scmp.eq.s32.totalorder %s21_s26, 0  ;;  %p31_p1 = scmp.ne.s32.totalorder %s2958_s22, %s2954_s21 }
   0x5   : > { %p32_p2 = scmp.eq.s32.totalorder %s2962_s23, 0  ;;  %p2494_p4 = scmp.ge.s32.totalorder %s2962_s23, 2 }
   0x6   : > { %s3029_s28 = scalar_select %p22_p0, %s2958_s22, %s24_s27  }
   0x7   : > { %p33_p3 = por %p32_p2, %p31_p1  ;;  %198 = sbr.rel (%p2494_p4) target bundleno = 39 (0x27), region = 36 }
   0xe   : > { %201 = sbr.rel (!%p33_p3) target bundleno = 39 (0x27), region = 40  ;;  %s203_s29 = sand.u32 (%p33_p3), 1, %s2958_s22  }
   0xf   : > { %s2496_s30 = sshll.u32 (%p33_p3), %s2962_s23, 2  ;;  %s2495_s7 = sshll.u32 (%p33_p3), %s203_s29, 7 }
  0x10   : > { %s3037_s10 = scalar_lea.vmem (%p33_p3), %s4210_s0, %s2496_s30  ;;  %s3041_s11 = scalar_lea.vmem (%p33_p3), [#allocation4], %s2495_s7 }
  0x11   : > { %v223_v0 = vld [vmem:[%s3037_s10] sm:$0xf] (%p33_p3)  ;;  %v225_v1 = vld [vmem:[%s3037_s10 + $0x8] sm:$0xf] (%p33_p3)  ;;  %v227_v2 = vld [vmem:[%s3037_s10 + $0x10] sm:$0xf] (%p33_p3) }
  0x12   : > { %224 = vst [vmem:[%s3041_s11] sm:$0xf] (%p33_p3), %v223_v0  ;;  %226 = vst [vmem:[%s3041_s11 + $0x4] sm:$0xf] (%p33_p3), %v225_v1  ;;  %v229_v3 = vld [vmem:[%s3037_s10 + $0x18] sm:$0xf] (%p33_p3) }
  0x13   : > { %v231_v4 = vld [vmem:[%s3037_s10 + $0x20] sm:$0xf] (%p33_p3)  ;;  %228 = vst [vmem:[%s3041_s11 + $0x8] sm:$0xf] (%p33_p3), %v227_v2  ;;  %230 = vst [vmem:[%s3041_s11 + $0xc] sm:$0xf] (%p33_p3), %v229_v3 }
  0x14   : > { %232 = vst [vmem:[%s3041_s11 + $0x10] sm:$0xf] (%p33_p3), %v231_v4  ;;  %v233_v5 = vld [vmem:[%s3037_s10 + $0x28] sm:$0xf] (%p33_p3)  ;;  %v235_v6 = vld [vmem:[%s3037_s10 + $0x30] sm:$0xf] (%p33_p3) }
  0x15   : > { %v237_v7 = vld [vmem:[%s3037_s10 + $0x38] sm:$0xf]  ;;  %234 = vst [vmem:[%s3041_s11 + $0x14] sm:$0xf] %v233_v5  ;;  %236 = vst [vmem:[%s3041_s11 + $0x18] sm:$0xf] %v235_v6 }
  0x16   : > { %238 = vst [vmem:[%s3041_s11 + $0x1c] sm:$0xf] %v237_v7  ;;  %v239_v8 = vld [vmem:[%s3037_s10 + $0x40] sm:$0xf]  ;;  %v241_v9 = vld [vmem:[%s3037_s10 + $0x48] sm:$0xf] }
  0x17   : > { %v243_v10 = vld [vmem:[%s3037_s10 + $0x50] sm:$0xf]  ;;  %240 = vst [vmem:[%s3041_s11 + $0x20] sm:$0xf] %v239_v8  ;;  %242 = vst [vmem:[%s3041_s11 + $0x24] sm:$0xf] %v241_v9 }
  0x18   : > { %244 = vst [vmem:[%s3041_s11 + $0x28] sm:$0xf] %v243_v10  ;;  %v245_v11 = vld [vmem:[%s3037_s10 + $0x58] sm:$0xf]  ;;  %v247_v12 = vld [vmem:[%s3037_s10 + $0x60] sm:$0xf] }
  0x19   : > { %v249_v13 = vld [vmem:[%s3037_s10 + $0x68] sm:$0xf]  ;;  %246 = vst [vmem:[%s3041_s11 + $0x2c] sm:$0xf] %v245_v11  ;;  %248 = vst [vmem:[%s3041_s11 + $0x30] sm:$0xf] %v247_v12 }
  0x1a   : > { %250 = vst [vmem:[%s3041_s11 + $0x34] sm:$0xf] %v249_v13  ;;  %v251_v14 = vld [vmem:[%s3037_s10 + $0x70] sm:$0xf]  ;;  %v253_v15 = vld [vmem:[%s3037_s10 + $0x78] sm:$0xf] }
  0x1b   : > { %v255_v16 = vld [vmem:[%s3037_s10 + $0x80] sm:$0xf]  ;;  %252 = vst [vmem:[%s3041_s11 + $0x38] sm:$0xf] %v251_v14  ;;  %254 = vst [vmem:[%s3041_s11 + $0x3c] sm:$0xf] %v253_v15 }
  0x1c   : > { %256 = vst [vmem:[%s3041_s11 + $0x40] sm:$0xf] %v255_v16  ;;  %v257_v17 = vld [vmem:[%s3037_s10 + $0x88] sm:$0xf]  ;;  %v259_v18 = vld [vmem:[%s3037_s10 + $0x90] sm:$0xf] }
  0x1d   : > { %v261_v19 = vld [vmem:[%s3037_s10 + $0x98] sm:$0xf]  ;;  %258 = vst [vmem:[%s3041_s11 + $0x44] sm:$0xf] %v257_v17  ;;  %260 = vst [vmem:[%s3041_s11 + $0x48] sm:$0xf] %v259_v18 }
  0x1e   : > { %262 = vst [vmem:[%s3041_s11 + $0x4c] sm:$0xf] %v261_v19  ;;  %v263_v20 = vld [vmem:[%s3037_s10 + $0xa0] sm:$0xf]  ;;  %v265_v21 = vld [vmem:[%s3037_s10 + $0xa8] sm:$0xf] }
  0x1f   : > { %v267_v22 = vld [vmem:[%s3037_s10 + $0xb0] sm:$0xf]  ;;  %264 = vst [vmem:[%s3041_s11 + $0x50] sm:$0xf] %v263_v20  ;;  %266 = vst [vmem:[%s3041_s11 + $0x54] sm:$0xf] %v265_v21 }
  0x20   : > { %268 = vst [vmem:[%s3041_s11 + $0x58] sm:$0xf] %v267_v22  ;;  %v269_v23 = vld [vmem:[%s3037_s10 + $0xb8] sm:$0xf]  ;;  %v271_v24 = vld [vmem:[%s3037_s10 + $0xc0] sm:$0xf] }
  0x21   : > { %v273_v25 = vld [vmem:[%s3037_s10 + $0xc8] sm:$0xf]  ;;  %270 = vst [vmem:[%s3041_s11 + $0x5c] sm:$0xf] %v269_v23  ;;  %272 = vst [vmem:[%s3041_s11 + $0x60] sm:$0xf] %v271_v24 }
  0x22   : > { %274 = vst [vmem:[%s3041_s11 + $0x64] sm:$0xf] %v273_v25  ;;  %v275_v26 = vld [vmem:[%s3037_s10 + $0xd0] sm:$0xf]  ;;  %v277_v27 = vld [vmem:[%s3037_s10 + $0xd8] sm:$0xf] }
  0x23   : > { %v279_v28 = vld [vmem:[%s3037_s10 + $0xe0] sm:$0xf]  ;;  %276 = vst [vmem:[%s3041_s11 + $0x68] sm:$0xf] %v275_v26  ;;  %278 = vst [vmem:[%s3041_s11 + $0x6c] sm:$0xf] %v277_v27 }
  0x24   : > { %280 = vst [vmem:[%s3041_s11 + $0x70] sm:$0xf] %v279_v28  ;;  %v281_v29 = vld [vmem:[%s3037_s10 + $0xe8] sm:$0xf]  ;;  %v283_v30 = vld [vmem:[%s3037_s10 + $0xf0] sm:$0xf] }
  0x25   : > { %v285_v31 = vld [vmem:[%s3037_s10 + $0xf8] sm:$0xf]  ;;  %282 = vst [vmem:[%s3041_s11 + $0x74] sm:$0xf] %v281_v29  ;;  %284 = vst [vmem:[%s3041_s11 + $0x78] sm:$0xf] %v283_v30 }
  0x26   : > { %286 = vst [vmem:[%s3041_s11 + $0x7c] sm:$0xf] %v285_v31 }
  0x27 PF: > { %p2497_p5 = scmp.ge.s32.totalorder %s2962_s23, 1  ;;  %p372_p6 = scmp.lt.s32.totalorder %s2962_s23, 3 }
  0x29   : > { %p373_p7 = pnand %p2497_p5, %p372_p6 }
  0x2b   : > { %376 = sbr.rel (%p373_p7) target bundleno = 999 (0x3e7), region = 81 }
  0x32   : > { %s379_s12 = sand.u32 1, %s2954_s21   ;;  %p2499_p8 = scmp.ne.s32.totalorder %s3017_s24, 0 }
  0x33   : > { %s2498_s13 = sshll.u32 %s379_s12, 7  ;;  %vm643_vm0 = vcmask (!%p2499_p8), 130112   ;;  %vm650_vm1 = vcmask (!%p2499_p8), 195712   ;;  %vm657_vm2 = vcmask (!%p2499_p8), 261312   ;;  %vm664_vm3 = vcmask (!%p2499_p8), 326912  }
  0x34   : > { %s3108_s14 = scalar_lea.vmem [#allocation4], %s2498_s13  ;;  %vm671_vm4 = vcmask (!%p2499_p8), 392512   ;;  %vm678_vm5 = vcmask (!%p2499_p8), 458112   ;;  %vm685_vm6 = vcmask (!%p2499_p8), 523712   ;;  %vm692_vm7 = vcmask (!%p2499_p8), 589312  }
  0x35   : > { %v3111_v32 = vld [vmem:[%s3108_s14 + $0x8] sm:$0xff]   ;;  %v3114_v33 = vld [vmem:[%s3108_s14] sm:$0xff]   ;;  %v3125_v38 = vld [vmem:[%s3108_s14 + $0x10] sm:$0xff]   ;;  %vm699_vm8 = vcmask (!%p2499_p8), 654912   ;;  %vm706_vm9 = vcmask (!%p2499_p8), 720512   ;;  %vm713_vm10 = vcmask (!%p2499_p8), 786112  }
  0x36   : > { %v2609_v34 = vunpack.c.l.bf16 %v3111_v32  ;;  %v2605_v35 = vunpack.c.l.bf16 %v3114_v33  ;;  %v2610_v36 = vunpack.c.h.bf16 %v3111_v32  ;;  %v2606_v37 = vunpack.c.h.bf16 %v3114_v33  ;;  %v3134_v41 = vld [vmem:[%s3108_s14 + $0x18] sm:$0xff]   ;;  %v3143_v44 = vld [vmem:[%s3108_s14 + $0x20] sm:$0xff]   ;;  %v3152_v47 = vld [vmem:[%s3108_s14 + $0x28] sm:$0xff]  }
  0x37   : > { %v2614_v39 = vunpack.c.h.bf16 %v3125_v38  ;;  %v2613_v40 = vunpack.c.l.bf16 %v3125_v38  ;;  %v2618_v42 = vunpack.c.h.bf16 %v3134_v41  ;;  %v2617_v43 = vunpack.c.l.bf16 %v3134_v41  ;;  %v3161_v50 = vld [vmem:[%s3108_s14 + $0x30] sm:$0xff]   ;;  %v2673_v53 = vld [vmem:[%s3108_s14 + $0x38] sm:$0xff]   ;;  %v2674_v56 = vld [vmem:[%s3108_s14 + $0x40] sm:$0xff]  }
  0x38   : > { %472 = vmax.xlane.f32.xlu1 %v2609_v34  ;;  %468 = vmax.xlane.f32.xlu0 %v2605_v35  ;;  %v2622_v45 = vunpack.c.h.bf16 %v3143_v44  ;;  %v2621_v46 = vunpack.c.l.bf16 %v3143_v44  ;;  %v2626_v48 = vunpack.c.h.bf16 %v3152_v47  ;;  %v2625_v49 = vunpack.c.l.bf16 %v3152_v47  ;;  %v2675_v59 = vld [vmem:[%s3108_s14 + $0x48] sm:$0xff]   ;;  %v2676_v62 = vld [vmem:[%s3108_s14 + $0x50] sm:$0xff]   ;;  %v2677_v1 = vld [vmem:[%s3108_s14 + $0x58] sm:$0xff]  }
  0x39   : > { %v2630_v51 = vunpack.c.h.bf16 %v3161_v50  ;;  %v2629_v52 = vunpack.c.l.bf16 %v3161_v50  ;;  %v2634_v54 = vunpack.c.h.bf16 %v2673_v53  ;;  %v2633_v55 = vunpack.c.l.bf16 %v2673_v53  ;;  %v2678_v4 = vld [vmem:[%s3108_s14 + $0x60] sm:$0xff]   ;;  %v2679_v7 = vld [vmem:[%s3108_s14 + $0x68] sm:$0xff]   ;;  %v2680_v10 = vld [vmem:[%s3108_s14 + $0x70] sm:$0xff]  }
  0x3a   : > { %v2638_v57 = vunpack.c.h.bf16 %v2674_v56  ;;  %v2637_v58 = vunpack.c.l.bf16 %v2674_v56  ;;  %v2642_v60 = vunpack.c.h.bf16 %v2675_v59  ;;  %v2641_v61 = vunpack.c.l.bf16 %v2675_v59  ;;  %v2681_v13 = vld [vmem:[%s3108_s14 + $0x78] sm:$0xff]  }
  0x3b   : > { %v2646_v63 = vunpack.c.h.bf16 %v2676_v62  ;;  %v2645_v0 = vunpack.c.l.bf16 %v2676_v62  ;;  %v2650_v2 = vunpack.c.h.bf16 %v2677_v1  ;;  %v2649_v3 = vunpack.c.l.bf16 %v2677_v1 }
  0x3c   : > { %474 = vmax.xlane.f32.xlu1 %v2610_v36  ;;  %470 = vmax.xlane.f32.xlu0 %v2606_v37  ;;  %v2654_v5 = vunpack.c.h.bf16 %v2678_v4  ;;  %v2653_v6 = vunpack.c.l.bf16 %v2678_v4  ;;  %v2658_v8 = vunpack.c.h.bf16 %v2679_v7  ;;  %v2657_v9 = vunpack.c.l.bf16 %v2679_v7 }
  0x3d   : > { %v2662_v11 = vunpack.c.h.bf16 %v2680_v10  ;;  %v2661_v12 = vunpack.c.l.bf16 %v2680_v10  ;;  %v2666_v14 = vunpack.c.h.bf16 %v2681_v13  ;;  %v2665_v15 = vunpack.c.l.bf16 %v2681_v13 }
  0x3e   : > { %vm720_vm11 = vcmask (!%p2499_p8), 851712   ;;  %vm727_vm12 = vcmask (!%p2499_p8), 917312   ;;  %vm734_vm13 = vcmask (!%p2499_p8), 982912   ;;  %vm741_vm14 = vcmask (!%p2499_p8), 1048512  }
  0x3f   : > { %vm822_vm15 = vcmask (!%p2499_p8), 1041409  }
  0x40   : > { %478 = vmax.xlane.f32.xlu1 %v2614_v39  ;;  %476 = vmax.xlane.f32.xlu0 %v2613_v40 }
  0x44   : > { %482 = vmax.xlane.f32.xlu1 %v2618_v42  ;;  %480 = vmax.xlane.f32.xlu0 %v2617_v43 }
  0x48   : > { %486 = vmax.xlane.f32.xlu1 %v2622_v45  ;;  %484 = vmax.xlane.f32.xlu0 %v2621_v46 }
  0x4c   : > { %490 = vmax.xlane.f32.xlu1 %v2626_v48  ;;  %488 = vmax.xlane.f32.xlu0 %v2625_v49 }
  0x50   : > { %494 = vmax.xlane.f32.xlu1 %v2630_v51  ;;  %492 = vmax.xlane.f32.xlu0 %v2629_v52 }
  0x54   : > { %498 = vmax.xlane.f32.xlu1 %v2634_v54  ;;  %496 = vmax.xlane.f32.xlu0 %v2633_v55 }
  0x58   : > { %502 = vmax.xlane.f32.xlu1 %v2638_v57  ;;  %500 = vmax.xlane.f32.xlu0 %v2637_v58 }
  0x5c   : > { %506 = vmax.xlane.f32.xlu1 %v2642_v60  ;;  %504 = vmax.xlane.f32.xlu0 %v2641_v61 }
  0x60   : > { %510 = vmax.xlane.f32.xlu1 %v2646_v63  ;;  %508 = vmax.xlane.f32.xlu0 %v2645_v0 }
  0x64   : > { %514 = vmax.xlane.f32.xlu1 %v2650_v2  ;;  %512 = vmax.xlane.f32.xlu0 %v2649_v3 }
  0x68   : > { %518 = vmax.xlane.f32.xlu1 %v2654_v5  ;;  %516 = vmax.xlane.f32.xlu0 %v2653_v6 }
  0x6c   : > { %522 = vmax.xlane.f32.xlu1 %v2658_v8  ;;  %520 = vmax.xlane.f32.xlu0 %v2657_v9 }
  0x70   : > { %526 = vmax.xlane.f32.xlu1 %v2662_v11  ;;  %524 = vmax.xlane.f32.xlu0 %v2661_v12 }
  0x74   : > { %530 = vmax.xlane.f32.xlu1 %v2666_v14  ;;  %528 = vmax.xlane.f32.xlu0 %v2665_v15 }
  0x78   : > { %534 = vadd.xlane.f32.xlu1 %v2606_v37  ;;  %532 = vadd.xlane.f32.xlu0 %v2605_v35 }
  0x7c   : > { %538 = vadd.xlane.f32.xlu1 %v2610_v36  ;;  %536 = vadd.xlane.f32.xlu0 %v2609_v34 }
  0x80   : > { %542 = vadd.xlane.f32.xlu1 %v2614_v39  ;;  %540 = vadd.xlane.f32.xlu0 %v2613_v40 }
  0x84   : > { %546 = vadd.xlane.f32.xlu1 %v2618_v42  ;;  %544 = vadd.xlane.f32.xlu0 %v2617_v43 }
  0x88   : > { %550 = vadd.xlane.f32.xlu1 %v2622_v45  ;;  %548 = vadd.xlane.f32.xlu0 %v2621_v46 }
  0x8c   : > { %554 = vadd.xlane.f32.xlu1 %v2626_v48  ;;  %552 = vadd.xlane.f32.xlu0 %v2625_v49 }
  0x90   : > { %558 = vadd.xlane.f32.xlu1 %v2630_v51  ;;  %556 = vadd.xlane.f32.xlu0 %v2629_v52 }
  0x94   : > { %562 = vadd.xlane.f32.xlu1 %v2634_v54  ;;  %560 = vadd.xlane.f32.xlu0 %v2633_v55 }
  0x98   : > { %566 = vadd.xlane.f32.xlu1 %v2638_v57  ;;  %564 = vadd.xlane.f32.xlu0 %v2637_v58 }
  0x9c   : > { %570 = vadd.xlane.f32.xlu1 %v2642_v60  ;;  %568 = vadd.xlane.f32.xlu0 %v2641_v61 }
  0xa0   : > { %574 = vadd.xlane.f32.xlu1 %v2646_v63  ;;  %572 = vadd.xlane.f32.xlu0 %v2645_v0 }
  0xa4   : > { %578 = vadd.xlane.f32.xlu1 %v2650_v2  ;;  %576 = vadd.xlane.f32.xlu0 %v2649_v3 }
  0xa8   : > { %582 = vadd.xlane.f32.xlu1 %v2654_v5  ;;  %580 = vadd.xlane.f32.xlu0 %v2653_v6 }
  0xac   : > { %586 = vadd.xlane.f32.xlu1 %v2658_v8  ;;  %584 = vadd.xlane.f32.xlu0 %v2657_v9 }
  0xb0   : > { %590 = vadd.xlane.f32.xlu1 %v2662_v11  ;;  %588 = vadd.xlane.f32.xlu0 %v2661_v12 }
  0xb4   : > { %594 = vadd.xlane.f32.xlu1 %v2666_v14  ;;  %592 = vadd.xlane.f32.xlu0 %v2665_v15 }
  0xc5   : > { %v3202_v16 = vpop.xlane.xlu1 %472  ;;  %v3204_v17 = vpop.xlane.xlu0 %468 }
  0xc6   : > { %4234 = vst [vmem:[#allocation8_spill] sm:$0xff] %v3202_v16  ;;  %4235 = vst [vmem:[#allocation9_spill] sm:$0xff] %v3204_v17 }
  0xc9   : > { %v3206_v18 = vpop.xlane.xlu1 %474  ;;  %v3208_v19 = vpop.xlane.xlu0 %470 }
  0xca   : > { %4236 = vst [vmem:[#allocation10_spill] sm:$0xff] %v3206_v18  ;;  %4237 = vst [vmem:[#allocation11_spill] sm:$0xff] %v3208_v19 }
  0xcd   : > { %v3210_v20 = vpop.xlane.xlu1 %478  ;;  %v3212_v21 = vpop.xlane.xlu0 %476 }
  0xce   : > { %4238 = vst [vmem:[#allocation12_spill] sm:$0xff] %v3210_v20  ;;  %4239 = vst [vmem:[#allocation13_spill] sm:$0xff] %v3212_v21 }
  0xd1   : > { %v3214_v22 = vpop.xlane.xlu1 %482  ;;  %v3216_v23 = vpop.xlane.xlu0 %480 }
  0xd2   : > { %4240 = vst [vmem:[#allocation14_spill] sm:$0xff] %v3214_v22  ;;  %4241 = vst [vmem:[#allocation15_spill] sm:$0xff] %v3216_v23 }
  0xd5   : > { %v3218_v24 = vpop.xlane.xlu1 %486  ;;  %v3220_v25 = vpop.xlane.xlu0 %484 }
  0xd9   : > { %v3222_v26 = vpop.xlane.xlu1 %490  ;;  %v3224_v27 = vpop.xlane.xlu0 %488 }
  0xda   : > { %4242 = vst [vmem:[#allocation16_spill] sm:$0xff] %v3222_v26 }
  0xdd   : > { %v3226_v28 = vpop.xlane.xlu1 %494  ;;  %v3228_v29 = vpop.xlane.xlu0 %492 }
  0xde   : > { %4243 = vst [vmem:[#allocation17_spill] sm:$0xff] %v3228_v29 }
  0xe1   : > { %v3230_v30 = vpop.xlane.xlu1 %498  ;;  %v3232_v31 = vpop.xlane.xlu0 %496 }
  0xe5   : > { %v3234_v32 = vpop.xlane.xlu1 %502  ;;  %v3236_v33 = vpop.xlane.xlu0 %500 }
  0xe6   : > { %4244 = vst [vmem:[#allocation18_spill] sm:$0xff] %v3234_v32 }
  0xe9   : > { %v3238_v34 = vpop.xlane.xlu1 %506  ;;  %v3240_v35 = vpop.xlane.xlu0 %504 }
  0xed   : > { %v3242_v36 = vpop.xlane.xlu1 %510  ;;  %v3244_v37 = vpop.xlane.xlu0 %508 }
  0xf1   : > { %v3246_v38 = vpop.xlane.xlu1 %514  ;;  %v3248_v39 = vpop.xlane.xlu0 %512 }
  0xf5   : > { %v3250_v40 = vpop.xlane.xlu1 %518  ;;  %v3252_v41 = vpop.xlane.xlu0 %516 }
  0xf9   : > { %v3254_v42 = vpop.xlane.xlu1 %522  ;;  %v3256_v43 = vpop.xlane.xlu0 %520 }
  0xfd   : > { %v3258_v44 = vpop.xlane.xlu1 %526  ;;  %v3260_v45 = vpop.xlane.xlu0 %524 }
 0x101   : > { %v3262_v46 = vpop.xlane.xlu1 %530  ;;  %v3264_v47 = vpop.xlane.xlu0 %528 }
 0x105   : > { %v3266_v48 = vpop.xlane.xlu1 %534  ;;  %v3268_v49 = vpop.xlane.xlu0 %532 }
 0x109   : > { %v3270_v50 = vpop.xlane.xlu1 %538  ;;  %v3272_v51 = vpop.xlane.xlu0 %536 }
 0x10a   : > { %4245 = vst [vmem:[#allocation19_spill] sm:$0xff] %v3270_v50  ;;  %4246 = vst [vmem:[#allocation20_spill] sm:$0xff] %v3272_v51 }
 0x10d   : > { %v3274_v52 = vpop.xlane.xlu1 %542  ;;  %v3276_v53 = vpop.xlane.xlu0 %540 }
 0x10e   : > { %4247 = vst [vmem:[#allocation21_spill] sm:$0xff] %v3276_v53 }
 0x111   : > { %v3278_v54 = vpop.xlane.xlu1 %546  ;;  %v3280_v55 = vpop.xlane.xlu0 %544 }
 0x112   : > { %4248 = vst [vmem:[#allocation22_spill] sm:$0xff] %v3278_v54 }
 0x115   : > { %v3282_v56 = vpop.xlane.xlu1 %550  ;;  %v3284_v57 = vpop.xlane.xlu0 %548 }
 0x116   : > { %4249 = vst [vmem:[#allocation23_spill] sm:$0xff] %v3282_v56  ;;  %4250 = vst [vmem:[#allocation24_spill] sm:$0xff] %v3284_v57 }
 0x119   : > { %v3286_v58 = vpop.xlane.xlu1 %554  ;;  %v3288_v59 = vpop.xlane.xlu0 %552 }
 0x11a   : > { %4251 = vst [vmem:[#allocation25_spill] sm:$0xff] %v3286_v58  ;;  %4252 = vst [vmem:[#allocation26_spill] sm:$0xff] %v3288_v59 }
 0x11d   : > { %v3290_v60 = vpop.xlane.xlu1 %558  ;;  %v3292_v61 = vpop.xlane.xlu0 %556 }
 0x11e   : > { %4253 = vst [vmem:[#allocation27_spill] sm:$0xff] %v3290_v60  ;;  %4254 = vst [vmem:[#allocation28_spill] sm:$0xff] %v3292_v61 }
 0x121   : > { %v3294_v62 = vpop.xlane.xlu1 %562  ;;  %v3296_v63 = vpop.xlane.xlu0 %560 }
 0x122   : > { %4255 = vst [vmem:[#allocation29_spill] sm:$0xff] %v3294_v62  ;;  %4256 = vst [vmem:[#allocation30_spill] sm:$0xff] %v3296_v63  ;;  %v632_v62 = vlaneseq (!%p2499_p8) }
 0x124   : > { %v3331_v63 = vand.u32 (!%p2499_p8), 127, %v632_v62 }
 0x125   : > { %v3298_v0 = vpop.xlane.xlu1 %566  ;;  %v3300_v1 = vpop.xlane.xlu0 %564 }
 0x126   : > { %4257 = vst [vmem:[#allocation31_spill] sm:$0xff] %v3298_v0  ;;  %4258 = vst [vmem:[#allocation32_spill] sm:$0xff] %v3300_v1  ;;  %v694_v0 = vadd.s32 (!%p2499_p8), 4294967224, %v3331_v63  ;;  %v701_v1 = vadd.s32 (!%p2499_p8), 4294967216, %v3331_v63  ;;  %v722_v61 = vadd.s32 (!%p2499_p8), 4294967192, %v3331_v63 }
 0x129   : > { %v3302_v2 = vpop.xlane.xlu1 %570  ;;  %v3304_v3 = vpop.xlane.xlu0 %568 }
 0x12a   : > { %4259 = vst [vmem:[#allocation33_spill] sm:$0xff] %v3302_v2  ;;  %4260 = vst [vmem:[#allocation34_spill] sm:$0xff] %v3304_v3 }
 0x12d   : > { %v3306_v4 = vpop.xlane.xlu1 %574  ;;  %v3308_v5 = vpop.xlane.xlu0 %572 }
 0x12e   : > { %4261 = vst [vmem:[#allocation35_spill] sm:$0xff] %v3306_v4  ;;  %4262 = vst [vmem:[#allocation36_spill] sm:$0xff] %v3308_v5 }
 0x131   : > { %v3310_v6 = vpop.xlane.xlu1 %578  ;;  %v3312_v7 = vpop.xlane.xlu0 %576 }
 0x132   : > { %4263 = vst [vmem:[#allocation37_spill] sm:$0xff] %v3310_v6  ;;  %4264 = vst [vmem:[#allocation38_spill] sm:$0xff] %v3312_v7 }
 0x135   : > { %v3314_v8 = vpop.xlane.xlu1 %582  ;;  %v3316_v9 = vpop.xlane.xlu0 %580 }
 0x136   : > { %4265 = vst [vmem:[#allocation39_spill] sm:$0xff] %v3314_v8  ;;  %4266 = vst [vmem:[#allocation40_spill] sm:$0xff] %v3316_v9  ;;  %v3333_v8 = vshrl.u32 (!%p2499_p8), %v632_v62, 7  ;;  %v666_v62 = vadd.s32 (!%p2499_p8), 4294967256, %v3331_v63  ;;  %v680_v9 = vadd.s32 (!%p2499_p8), 4294967240, %v3331_v63 }
 0x138   : > { %v3361_v2 = vsub.s32 (!%p2499_p8), %v666_v62, %v3333_v8  ;;  %v3411_v59 = vsub.s32 (!%p2499_p8), %v722_v61, %v3333_v8 }
 0x139   : > { %v3318_v10 = vpop.xlane.xlu1 %586  ;;  %v3320_v11 = vpop.xlane.xlu0 %584 }
 0x13a   : > { %4267 = vst [vmem:[#allocation41_spill] sm:$0xff] %v3318_v10  ;;  %4268 = vst [vmem:[#allocation42_spill] sm:$0xff] %v3320_v11  ;;  %v659_v10 = vadd.s32 (!%p2499_p8), 4294967264, %v3331_v63  ;;  %v673_v11 = vadd.s32 (!%p2499_p8), 4294967248, %v3331_v63 }
 0x13c   : > { %599 = sbr.rel (%p2499_p8) target bundleno = 367 (0x16f), region = 89  ;;  %v3358_v5 = vsub.s32 (!%p2499_p8), %v659_v10, %v3333_v8  ;;  %v3364_v3 = vsub.s32 (!%p2499_p8), %v673_v11, %v3333_v8 }
 0x13d   : > { %v3322_v12 = vpop.xlane.xlu1 %590  ;;  %v3324_v13 = vpop.xlane.xlu0 %588 }
 0x13e   : > { %4269 = vst [vmem:[#allocation43_spill] sm:$0xff] %v3322_v12  ;;  %4270 = vst [vmem:[#allocation44_spill] sm:$0xff] %v3324_v13  ;;  %v3337_v12 = vsub.s32 (!%p2499_p8), %v3331_v63, %v3333_v8  ;;  %v652_v13 = vadd.s32 (!%p2499_p8), 4294967272, %v3331_v63  ;;  %v663_v11 = vrot.slane (!%p2499_p8), %v3212_v21, %v3358_v5  ;;  %v677_v62 = vrot.slane (!%p2499_p8), %v3216_v23, %v3364_v3 }
 0x13f   : > { %v715_v23 = vadd.s32 (!%p2499_p8), 4294967200, %v3331_v63 }
 0x140   : > { %v637_v6 = vrot.slane (!%p2499_p8), %v3204_v17, %v3337_v12  ;;  %v3355_v4 = vsub.s32 (!%p2499_p8), %v652_v13, %v3333_v8  ;;  %v3367_v17 = vsub.s32 (!%p2499_p8), %v680_v9, %v3333_v8  ;;  %v670_v9 = vrot.slane (!%p2499_p8), %v3210_v20, %v3361_v2 }
 0x141   : > { %v3326_v14 = vpop.xlane.xlu1 %594  ;;  %v3328_v15 = vpop.xlane.xlu0 %592  ;;  %v708_v20 = vadd.s32 (!%p2499_p8), 4294967208, %v3331_v63 }
 0x142   : > { %4271 = vst [vmem:[#allocation45_spill] sm:$0xff] %v3326_v14  ;;  %4272 = vst [vmem:[#allocation46_spill] sm:$0xff] %v3328_v15  ;;  %v638_v14 = vadd.s32 (!%p2499_p8), 4294967288, %v3331_v63  ;;  %v645_v15 = vadd.s32 (!%p2499_p8), 4294967280, %v3331_v63  ;;  %v656_v10 = vrot.slane (!%p2499_p8), %v3206_v18, %v3355_v4 }
 0x144   : > { %v3349_v60 = vsub.s32 %v638_v14, %v3333_v8  ;;  %v3352_v7 = vsub.s32 %v645_v15, %v3333_v8  ;;  %v687_v15 = vadd.s32 4294967232, %v3331_v63 }
 0x146   : > { %v642_v14 = vrot.slane %v3208_v19, %v3349_v60  ;;  %v649_v13 = vrot.slane %v3202_v16, %v3352_v7  ;;  %v684_v19 = vrot.slane %v3214_v22, %v3367_v17  ;;  %v3386_v18 = vsub.s32 %v687_v15, %v3333_v8 }
 0x147   : > { %v3401_v15 = vsub.s32 %v701_v1, %v3333_v8  ;;  %v729_v1 = vadd.s32 4294967184, %v3331_v63 }
 0x148   : > { %v644_v16 = vsel %vm643_vm0, %v642_v14, %v637_v6  ;;  %v691_v6 = vrot.slane %v3220_v25, %v3386_v18  ;;  %v3398_v14 = vsub.s32 %v694_v0, %v3333_v8 }
 0x149   : > { %v651_v21 = vsel %vm650_vm1, %v649_v13, %v644_v16  ;;  %v3405_v16 = vsub.s32 %v708_v20, %v3333_v8  ;;  %v3408_v13 = vsub.s32 %v715_v23, %v3333_v8  ;;  %v705_v20 = vrot.slane %v3224_v27, %v3401_v15 }
 0x14a   : > { %v658_v22 = vsel %vm657_vm2, %v656_v10, %v651_v21  ;;  %v698_v0 = vrot.slane %v3218_v24, %v3398_v14 }
 0x14b   : > { %v665_v58 = vsel %vm664_vm3, %v663_v11, %v658_v22  ;;  %v712_v22 = vrot.slane %v3222_v26, %v3405_v16  ;;  %v719_v23 = vrot.slane %v3228_v29, %v3408_v13  ;;  %v3428_v11 = vsub.s32 %v729_v1, %v3333_v8 }
 0x14c   : > { %v672_v21 = vsel %vm671_vm4, %v670_v9, %v665_v58  ;;  %v726_v58 = vrot.slane %v3226_v28, %v3411_v59  ;;  %v736_v9 = vadd.s32 4294967176, %v3331_v63  ;;  %v750_v26 = vrot.slane %v3234_v32, %v3349_v60 }
 0x14d   : > { %v679_v10 = vsel %vm678_vm5, %v677_v62, %v672_v21  ;;  %v746_v21 = vrot.slane %v3236_v33, %v3337_v12  ;;  %v755_v63 = vrot.slane %v3240_v35, %v3352_v7  ;;  %v765_v32 = vrot.slane %v3244_v37, %v3358_v5 }
 0x14e   : > { %v686_v61 = vsel %vm685_vm6, %v684_v19, %v679_v10  ;;  %v733_v19 = vrot.slane %v3232_v31, %v3428_v11  ;;  %v3440_v10 = vsub.s32 %v736_v9, %v3333_v8  ;;  %v770_v9 = vrot.slane %v3242_v36, %v3361_v2 }
 0x14f   : > { %v693_v62 = vsel %vm692_vm7, %v691_v6, %v686_v61  ;;  %v751_v1 = vsel %vm643_vm0, %v750_v26, %v746_v21  ;;  %v760_v61 = vrot.slane %v3238_v34, %v3355_v4  ;;  %v780_v21 = vrot.slane %v3246_v38, %v3367_v17 }
 0x150   : > { %v700_v29 = vsel %vm699_vm8, %v698_v0, %v693_v62  ;;  %v740_v62 = vrot.slane %v3230_v30, %v3440_v10  ;;  %v756_v8 = vsel %vm650_vm1, %v755_v63, %v751_v1  ;;  %v785_v63 = vrot.slane %v3252_v41, %v3386_v18 }
 0x151   : > { %v707_v6 = vsel %vm706_vm9, %v705_v20, %v700_v29  ;;  %v761_v26 = vsel %vm657_vm2, %v760_v61, %v756_v8  ;;  %v775_v20 = vrot.slane %v3248_v39, %v3364_v3  ;;  %v790_v61 = vrot.slane %v3250_v40, %v3398_v14 }
 0x152   : > { %v714_v0 = vsel %vm713_vm10, %v712_v22, %v707_v6  ;;  %v766_v6 = vsel %vm664_vm3, %v765_v32, %v761_v26  ;;  %v795_v8 = vrot.slane %v3256_v43, %v3401_v15 }
 0x153   : > { %v721_v29 = vsel %vm720_vm11, %v719_v23, %v714_v0  ;;  %v771_v23 = vsel %vm671_vm4, %v770_v9, %v766_v6  ;;  %v810_v9 = vrot.slane %v3258_v44, %v3411_v59  ;;  %v870_v6 = vrot.slane %v3272_v51, %v3352_v7 }
 0x154   : > { %v728_v22 = vsel %vm727_vm12, %v726_v58, %v721_v29  ;;  %v776_v0 = vsel %vm678_vm5, %v775_v20, %v771_v23  ;;  %v800_v58 = vrot.slane %v3254_v42, %v3405_v16  ;;  %v861_v20 = vrot.slane %v3268_v49, %v3337_v12 }
 0x155   : > { %v735_v1 = vsel %vm734_vm13, %v733_v19, %v728_v22  ;;  %v781_v29 = vsel %vm685_vm6, %v780_v21, %v776_v0  ;;  %v805_v19 = vrot.slane %v3260_v45, %v3408_v13  ;;  %v865_v22 = vrot.slane %v3266_v48, %v3349_v60 }
 0x156   : > { %v742_v32 = vsel %vm741_vm14, %v740_v62, %v735_v1  ;;  %v786_v26 = vsel %vm692_vm7, %v785_v63, %v781_v29  ;;  %v815_v21 = vrot.slane %v3264_v47, %v3428_v11  ;;  %v875_v1 = vrot.slane %v3270_v50, %v3355_v4 }
 0x157   : > { %v791_v62 = vsel %vm699_vm8, %v790_v61, %v786_v26  ;;  %v880_v63 = vrot.slane %v3276_v53, %v3358_v5  ;;  %v820_v0 = vrot.slane %v3262_v46, %v3440_v10  ;;  %v866_v29 = vsel %vm643_vm0, %v865_v22, %v861_v20 }
 0x158   : > { %v796_v23 = vsel %vm706_vm9, %v795_v8, %v791_v62  ;;  %v885_v51 = vrot.slane %v3274_v52, %v3361_v2  ;;  %v871_v26 = vsel %vm650_vm1, %v870_v6, %v866_v29  ;;  %v890_v50 = vrot.slane %v3280_v55, %v3364_v3 }
 0x159   : > { %v801_v61 = vsel %vm713_vm10, %v800_v58, %v796_v23  ;;  %v876_v8 = vsel %vm657_vm2, %v875_v1, %v871_v26  ;;  %v895_v62 = vrot.slane %v3278_v54, %v3367_v17  ;;  %v900_v20 = vrot.slane %v3284_v57, %v3386_v18  ;;  %v4273_v23 = vld [vmem:[#allocation26_spill] sm:$0xff]  ;;  %v4275_v54 = vld [vmem:[#allocation28_spill] sm:$0xff] }
 0x15a   : > { %v806_v53 = vsel %vm720_vm11, %v805_v19, %v801_v61  ;;  %v881_v58 = vsel %vm664_vm3, %v880_v63, %v876_v8  ;;  %v905_v6 = vrot.slane %v3282_v56, %v3398_v14  ;;  %v910_v29 = vrot.slane %v4273_v23, %v3401_v15  ;;  %v4274_v61 = vld [vmem:[#allocation25_spill] sm:$0xff]  ;;  %v4276_v63 = vld [vmem:[#allocation32_spill] sm:$0xff]  ;;  %v4277_v56 = vld [vmem:[#allocation31_spill] sm:$0xff] }
 0x15b   : > { %v811_v22 = vsel %vm727_vm12, %v810_v9, %v806_v53  ;;  %v886_v1 = vsel %vm671_vm4, %v885_v51, %v881_v58  ;;  %v915_v26 = vrot.slane %v4274_v61, %v3405_v16  ;;  %v920_v57 = vrot.slane %v4275_v54, %v3408_v13  ;;  %v4279_v61 = vld [vmem:[#allocation33_spill] sm:$0xff] }
 0x15c   : > { %v816_v19 = vsel %vm734_vm13, %v815_v21, %v811_v22  ;;  %v891_v9 = vsel %vm678_vm5, %v890_v50, %v886_v1  ;;  %v940_v8 = vrot.slane %v4276_v63, %v3337_v12  ;;  %v944_v23 = vrot.slane %v4277_v56, %v3349_v60  ;;  %v4278_v22 = vld [vmem:[#allocation34_spill] sm:$0xff]  ;;  %v4280_v12 = vld [vmem:[#allocation36_spill] sm:$0xff]  ;;  %v4281_v56 = vld [vmem:[#allocation35_spill] sm:$0xff] }
 0x15d   : > { %v821_v53 = vsel %vm741_vm14, %v820_v0, %v816_v19  ;;  %v896_v51 = vsel %vm685_vm6, %v895_v62, %v891_v9  ;;  %v949_v58 = vrot.slane %v4278_v22, %v3352_v7  ;;  %v954_v54 = vrot.slane %v4279_v61, %v3355_v4  ;;  %v4282_v7 = vld [vmem:[#allocation38_spill] sm:$0xff]  ;;  %v4284_v63 = vld [vmem:[#allocation37_spill] sm:$0xff] }
 0x15e   : > { %v823_v21 = vsel %vm822_vm15, %v821_v53, %v742_v32  ;;  %v901_v0 = vsel %vm692_vm7, %v900_v20, %v896_v51  ;;  %v945_v50 = vsel %vm643_vm0, %v944_v23, %v940_v8  ;;  %v959_v19 = vrot.slane %v4280_v12, %v3358_v5  ;;  %v4283_v53 = vld [vmem:[#allocation27_spill] sm:$0xff]  ;;  %v4287_v22 = vld [vmem:[#allocation30_spill] sm:$0xff]  ;;  %v4290_v12 = vld [vmem:[#allocation44_spill] sm:$0xff] }
 0x15f   : > { %825 = vst [vmem:[#allocation2] sm:$0x3] %v823_v21  ;;  %v964_v60 = vrot.slane %v4281_v56, %v3361_v2  ;;  %v906_v32 = vsel %vm699_vm8, %v905_v6, %v901_v0  ;;  %v950_v62 = vsel %vm650_vm1, %v949_v58, %v945_v50  ;;  %v969_v1 = vrot.slane %v4282_v7, %v3364_v3  ;;  %v4285_v6 = vld [vmem:[#allocation40_spill] sm:$0xff] }
 0x160   : > { %v911_v4 = vsel %vm706_vm9, %v910_v29, %v906_v32  ;;  %v925_v20 = vrot.slane %v4283_v53, %v3411_v59  ;;  %v955_v9 = vsel %vm657_vm2, %v954_v54, %v950_v62  ;;  %v974_v5 = vrot.slane %v4284_v63, %v3367_v17  ;;  %v4286_v29 = vld [vmem:[#allocation39_spill] sm:$0xff]  ;;  %v4288_v17 = vld [vmem:[#allocation42_spill] sm:$0xff]  ;;  %v4294_v53 = vld [vmem:[#allocation45_spill] sm:$0xff] }
 0x161   : > { %v916_v8 = vsel %vm713_vm10, %v915_v26, %v911_v4  ;;  %v960_v2 = vsel %vm664_vm3, %v959_v19, %v955_v9  ;;  %v979_v23 = vrot.slane %v4285_v6, %v3386_v18  ;;  %v984_v51 = vrot.slane %v4286_v29, %v3398_v14  ;;  %v4289_v18 = vld [vmem:[#allocation41_spill] sm:$0xff]  ;;  %v4292_v32 = vld [vmem:[#allocation43_spill] sm:$0xff] }
 0x162   : > { %v921_v21 = vsel %vm720_vm11, %v920_v57, %v916_v8  ;;  %v965_v3 = vsel %vm671_vm4, %v964_v60, %v960_v2  ;;  %v930_v58 = vrot.slane %v4287_v22, %v3428_v11  ;;  %v989_v26 = vrot.slane %v4288_v17, %v3401_v15  ;;  %v4291_v19 = vld [vmem:[#allocation29_spill] sm:$0xff] }
 0x163   : > { %v970_v61 = vsel %vm678_vm5, %v969_v1, %v965_v3  ;;  %v926_v54 = vsel %vm727_vm12, %v925_v20, %v921_v21  ;;  %v994_v57 = vrot.slane %v4289_v18, %v3405_v16  ;;  %v999_v14 = vrot.slane %v4290_v12, %v3408_v13  ;;  %v4293_v1 = vld [vmem:[#allocation46_spill] sm:$0xff] }
 0x164   : > { %v975_v0 = vsel %vm685_vm6, %v974_v5, %v970_v61  ;;  %v935_v56 = vrot.slane %v4291_v19, %v3440_v10  ;;  %v1004_v15 = vrot.slane %v4292_v32, %v3411_v59  ;;  %v931_v62 = vsel %vm734_vm13, %v930_v58, %v926_v54 }
 0x165   : > { %v980_v50 = vsel %vm692_vm7, %v979_v23, %v975_v0  ;;  %v1009_v16 = vrot.slane %v4293_v1, %v3428_v11  ;;  %v1014_v13 = vrot.slane %v4294_v53, %v3440_v10 }
 0x166   : > { %v985_v60 = vsel %vm699_vm8, %v984_v51, %v980_v50  ;;  %v936_v9 = vsel %vm741_vm14, %v935_v56, %v931_v62 }
 0x167   : > { %v990_v7 = vsel %vm706_vm9, %v989_v26, %v985_v60 }
 0x168   : > { %v995_v4 = vsel %vm713_vm10, %v994_v57, %v990_v7 }
 0x169   : > { %v1000_v20 = vsel %vm720_vm11, %v999_v14, %v995_v4 }
 0x16a   : > { %v1005_v63 = vsel %vm727_vm12, %v1004_v15, %v1000_v20 }
 0x16b   : > { %v1010_v59 = vsel %vm734_vm13, %v1009_v16, %v1005_v63 }
 0x16c   : > { %v1015_v5 = vsel %vm741_vm14, %v1014_v13, %v1010_v59 }
 0x16d   : > { %v1016_v8 = vsel %vm822_vm15, %v1015_v5, %v936_v9 }
 0x16e   : > { %1018 = vst [vmem:[#allocation3] sm:$0x3] %v1016_v8 }
 0x16f PF: > { %p2500_p9 = scmp.le.s32.totalorder %s3017_s24, 0 }
 0x170   : > { %v1056_v11 = vlaneseq (!%p2500_p9)  ;;  %vm1067_vm0 = vcmask (!%p2500_p9), 130112   ;;  %vm1074_vm1 = vcmask (!%p2500_p9), 195712   ;;  %vm1081_vm2 = vcmask (!%p2500_p9), 261312   ;;  %v4295_v61 = vld [vmem:[#allocation9_spill] sm:$0xff] (!%p2500_p9)  ;;  %v4296_v14 = vld [vmem:[#allocation11_spill] sm:$0xff] (!%p2500_p9)  ;;  %v4297_v56 = vld [vmem:[#allocation8_spill] sm:$0xff] (!%p2500_p9) }
 0x171   : > { %1022 = sbr.rel (%p2500_p9) target bundleno = 421 (0x1a5), region = 93  ;;  %vm1088_vm3 = vcmask (!%p2500_p9), 326912   ;;  %vm1095_vm4 = vcmask (!%p2500_p9), 392512   ;;  %vm1102_vm5 = vcmask (!%p2500_p9), 458112   ;;  %vm1109_vm6 = vcmask (!%p2500_p9), 523712   ;;  %v4298_v32 = vld [vmem:[#allocation10_spill] sm:$0xff] (!%p2500_p9) }
 0x172   : > { %v3590_v2 = vand.u32 (!%p2500_p9), 127, %v1056_v11  ;;  %v3592_v10 = vshrl.u32 (!%p2500_p9), %v1056_v11, 7  ;;  %vm1116_vm7 = vcmask (!%p2500_p9), 589312   ;;  %vm1123_vm8 = vcmask (!%p2500_p9), 654912   ;;  %v4299_v7 = vld [vmem:[#allocation13_spill] sm:$0xff] (!%p2500_p9)  ;;  %v4300_v16 = vld [vmem:[#allocation12_spill] sm:$0xff] (!%p2500_p9) }
 0x173   : > { %vm1130_vm9 = vcmask (!%p2500_p9), 720512   ;;  %v4301_v53 = vld [vmem:[#allocation15_spill] sm:$0xff] (!%p2500_p9)  ;;  %v4302_v20 = vld [vmem:[#allocation14_spill] sm:$0xff] (!%p2500_p9)  ;;  %vm1137_vm10 = vcmask (!%p2500_p9), 786112   ;;  %vm1144_vm11 = vcmask (!%p2500_p9), 851712   ;;  %vm1151_vm12 = vcmask (!%p2500_p9), 917312  }
 0x174   : > { %v3596_v6 = vsub.s32 (!%p2500_p9), %v3590_v2, %v3592_v10  ;;  %v1062_v23 = vadd.s32 (!%p2500_p9), 4294967288, %v3590_v2  ;;  %v1069_v21 = vadd.s32 (!%p2500_p9), 4294967280, %v3590_v2  ;;  %v1076_v3 = vadd.s32 (!%p2500_p9), 4294967272, %v3590_v2 }
 0x175   : > { %v1083_v29 = vadd.s32 (!%p2500_p9), 4294967264, %v3590_v2  ;;  %v1090_v51 = vadd.s32 (!%p2500_p9), 4294967256, %v3590_v2  ;;  %v1097_v22 = vadd.s32 (!%p2500_p9), 4294967248, %v3590_v2  ;;  %v1104_v58 = vadd.s32 (!%p2500_p9), 4294967240, %v3590_v2 }
 0x176   : > { %v1061_v17 = vrot.slane (!%p2500_p9), %v4295_v61, %v3596_v6  ;;  %v3608_v26 = vsub.s32 (!%p2500_p9), %v1062_v23, %v3592_v10  ;;  %v3611_v54 = vsub.s32 (!%p2500_p9), %v1069_v21, %v3592_v10  ;;  %v3614_v0 = vsub.s32 (!%p2500_p9), %v1076_v3, %v3592_v10 }
 0x177   : > { %v3617_v18 = vsub.s32 (!%p2500_p9), %v1083_v29, %v3592_v10  ;;  %v3620_v57 = vsub.s32 (!%p2500_p9), %v1090_v51, %v3592_v10  ;;  %v3623_v50 = vsub.s32 (!%p2500_p9), %v1097_v22, %v3592_v10  ;;  %v3626_v12 = vsub.s32 (!%p2500_p9), %v1104_v58, %v3592_v10 }
 0x178   : > { %v1066_v19 = vrot.slane %v4296_v14, %v3608_v26  ;;  %v1073_v60 = vrot.slane %v4297_v56, %v3611_v54  ;;  %v1080_v15 = vrot.slane %v4298_v32, %v3614_v0  ;;  %v1111_v62 = vadd.s32 4294967232, %v3590_v2 }
 0x179   : > { %v1087_v1 = vrot.slane %v4299_v7, %v3617_v18  ;;  %v1094_v4 = vrot.slane %v4300_v16, %v3620_v57  ;;  %v1101_v13 = vrot.slane %v4301_v53, %v3623_v50  ;;  %v1108_v9 = vrot.slane %v4302_v20, %v3626_v12 }
 0x17a   : > { %v1068_v63 = vsel %vm1067_vm0, %v1066_v19, %v1061_v17  ;;  %v3645_v59 = vsub.s32 %v1111_v62, %v3592_v10  ;;  %v1118_v5 = vadd.s32 4294967224, %v3590_v2  ;;  %v1125_v8 = vadd.s32 4294967216, %v3590_v2  ;;  %v4303_v62 = vld [vmem:[#allocation16_spill] sm:$0xff] }
 0x17b   : > { %v1075_v11 = vsel %vm1074_vm1, %v1073_v60, %v1068_v63  ;;  %v1132_v23 = vadd.s32 4294967208, %v3590_v2  ;;  %v1139_v21 = vadd.s32 4294967200, %v3590_v2  ;;  %v1146_v3 = vadd.s32 4294967192, %v3590_v2  ;;  %v4305_v63 = vld [vmem:[#allocation18_spill] sm:$0xff] }
 0x17c   : > { %v1082_v29 = vsel %vm1081_vm2, %v1080_v15, %v1075_v11  ;;  %v1115_v51 = vrot.slane %v3220_v25, %v3645_v59  ;;  %v3657_v22 = vsub.s32 %v1118_v5, %v3592_v10  ;;  %v3660_v58 = vsub.s32 %v1125_v8, %v3592_v10 }
 0x17d   : > { %v1089_v61 = vsel %vm1088_vm3, %v1087_v1, %v1082_v29  ;;  %v3664_v17 = vsub.s32 %v1132_v23, %v3592_v10  ;;  %v3667_v14 = vsub.s32 %v1139_v21, %v3592_v10  ;;  %v3670_v19 = vsub.s32 %v1146_v3, %v3592_v10  ;;  %v4304_v1 = vld [vmem:[#allocation17_spill] sm:$0xff] }
 0x17e   : > { %v1096_v56 = vsel %vm1095_vm4, %v1094_v4, %v1089_v61  ;;  %v1122_v25 = vrot.slane %v3218_v24, %v3657_v22  ;;  %v1153_v60 = vadd.s32 4294967184, %v3590_v2  ;;  %v1129_v15 = vrot.slane %v3224_v27, %v3660_v58 }
 0x17f   : > { %v1103_v32 = vsel %vm1102_vm5, %v1101_v13, %v1096_v56  ;;  %v1136_v7 = vrot.slane %v4303_v62, %v3664_v17  ;;  %v1143_v16 = vrot.slane %v4304_v1, %v3667_v14  ;;  %v1150_v4 = vrot.slane %v3226_v28, %v3670_v19 }
 0x180   : > { %v1110_v53 = vsel %vm1109_vm6, %v1108_v9, %v1103_v32  ;;  %v3687_v24 = vsub.s32 %v1153_v60, %v3592_v10  ;;  %v1160_v20 = vadd.s32 4294967176, %v3590_v2  ;;  %vm1158_vm13 = vcmask 982912  }
 0x181   : > { %v1117_v13 = vsel %vm1116_vm7, %v1115_v51, %v1110_v53  ;;  %v1170_v27 = vrot.slane %v3236_v33, %v3596_v6  ;;  %v1174_v5 = vrot.slane %v4305_v63, %v3608_v26  ;;  %v1179_v2 = vrot.slane %v3240_v35, %v3611_v54 }
 0x182   : > { %v1124_v8 = vsel %vm1123_vm8, %v1122_v25, %v1117_v13  ;;  %v1157_v9 = vrot.slane %v3232_v31, %v3687_v24  ;;  %v3699_v28 = vsub.s32 %v1160_v20, %v3592_v10  ;;  %v1184_v33 = vrot.slane %v3238_v34, %v3614_v0 }
 0x183   : > { %v1131_v11 = vsel %vm1130_vm9, %v1129_v15, %v1124_v8  ;;  %v1175_v23 = vsel %vm1067_vm0, %v1174_v5, %v1170_v27  ;;  %v1189_v21 = vrot.slane %v3244_v37, %v3617_v18  ;;  %v1194_v35 = vrot.slane %v3242_v36, %v3620_v57 }
 0x184   : > { %v1138_v3 = vsel %vm1137_vm10, %v1136_v7, %v1131_v11  ;;  %v1164_v31 = vrot.slane %v3230_v30, %v3699_v28  ;;  %v1180_v10 = vsel %vm1074_vm1, %v1179_v2, %v1175_v23  ;;  %v1199_v34 = vrot.slane %v3248_v39, %v3623_v50  ;;  %v4309_v11 = vld [vmem:[#allocation22_spill] sm:$0xff]  ;;  %v4310_v23 = vld [vmem:[#allocation24_spill] sm:$0xff] }
 0x185   : > { %v1145_v29 = vsel %vm1144_vm11, %v1143_v16, %v1138_v3  ;;  %v1185_v51 = vsel %vm1081_vm2, %v1184_v33, %v1180_v10  ;;  %v1204_v37 = vrot.slane %v3246_v38, %v3626_v12  ;;  %vm1165_vm14 = vcmask 1048512   ;;  %v4311_v3 = vld [vmem:[#allocation23_spill] sm:$0xff]  ;;  %v4312_v10 = vld [vmem:[#allocation26_spill] sm:$0xff] }
 0x186   : > { %v1152_v61 = vsel %vm1151_vm12, %v1150_v4, %v1145_v29  ;;  %v1190_v30 = vsel %vm1088_vm3, %v1189_v21, %v1185_v51  ;;  %v1209_v56 = vrot.slane %v3252_v41, %v3645_v59  ;;  %v1214_v60 = vrot.slane %v3250_v40, %v3657_v22 }
 0x187   : > { %v1159_v36 = vsel %vm1158_vm13, %v1157_v9, %v1152_v61  ;;  %v1195_v25 = vsel %vm1095_vm4, %v1194_v35, %v1190_v30  ;;  %v1219_v38 = vrot.slane %v3256_v43, %v3660_v58  ;;  %v1224_v32 = vrot.slane %v3254_v42, %v3664_v17  ;;  %v4306_v42 = vld [vmem:[#allocation20_spill] sm:$0xff]  ;;  %v1023_v35 = vld [vmem:[#allocation2] sm:$0x3] }
 0x188   : > { %v1200_v39 = vsel %vm1102_vm5, %v1199_v34, %v1195_v25  ;;  %v1166_v15 = vsel %vm1165_vm14, %v1164_v31, %v1159_v36  ;;  %v1229_v41 = vrot.slane %v3260_v45, %v3667_v14  ;;  %v1234_v7 = vrot.slane %v3258_v44, %v3670_v19  ;;  %v4307_v45 = vld [vmem:[#allocation19_spill] sm:$0xff]  ;;  %v4308_v44 = vld [vmem:[#allocation21_spill] sm:$0xff]  ;;  %v4314_v61 = vld [vmem:[#allocation28_spill] sm:$0xff] }
 0x189   : > { %v1205_v62 = vsel %vm1109_vm6, %v1204_v37, %v1200_v39  ;;  %v1287_v1 = vrot.slane %v3268_v49, %v3596_v6  ;;  %v1291_v43 = vrot.slane %v3266_v48, %v3608_v26  ;;  %v1296_v16 = vrot.slane %v4306_v42, %v3611_v54  ;;  %v4313_v34 = vld [vmem:[#allocation25_spill] sm:$0xff]  ;;  %v4315_v25 = vld [vmem:[#allocation32_spill] sm:$0xff]  ;;  %v4316_v39 = vld [vmem:[#allocation31_spill] sm:$0xff] }
 0x18a   : > { %v1210_v40 = vsel %vm1116_vm7, %v1209_v56, %v1205_v62  ;;  %v1239_v4 = vrot.slane %v3264_v47, %v3687_v24  ;;  %v1301_v20 = vrot.slane %v4307_v45, %v3614_v0  ;;  %v1306_v13 = vrot.slane %v4308_v44, %v3617_v18  ;;  %v4322_v44 = vld [vmem:[#allocation27_spill] sm:$0xff] }
 0x18b   : > { %v1215_v53 = vsel %vm1123_vm8, %v1214_v60, %v1210_v40  ;;  %v1244_v49 = vrot.slane %v3262_v46, %v3699_v28  ;;  %v1292_v48 = vsel %vm1067_vm0, %v1291_v43, %v1287_v1  ;;  %v1311_v63 = vrot.slane %v3274_v52, %v3620_v57  ;;  %v4318_v40 = vld [vmem:[#allocation33_spill] sm:$0xff] }
 0x18c   : > { %v1220_v27 = vsel %vm1130_vm9, %v1219_v38, %v1215_v53  ;;  %vm1246_vm15 = vcmask 1041409   ;;  %v1297_v47 = vsel %vm1074_vm1, %v1296_v16, %v1292_v48  ;;  %v1316_v8 = vrot.slane %v3280_v55, %v3623_v50 }
 0x18d   : > { %v1225_v5 = vsel %vm1137_vm10, %v1224_v32, %v1220_v27  ;;  %v1302_v2 = vsel %vm1081_vm2, %v1301_v20, %v1297_v47  ;;  %v1321_v46 = vrot.slane %v4309_v11, %v3626_v12  ;;  %v1326_v33 = vrot.slane %v4310_v23, %v3645_v59 }
 0x18e   : > { %v1230_v9 = vsel %vm1144_vm11, %v1229_v41, %v1225_v5  ;;  %v1307_v21 = vsel %vm1088_vm3, %v1306_v13, %v1302_v2  ;;  %v1331_v31 = vrot.slane %v4311_v3, %v3657_v22  ;;  %v1336_v55 = vrot.slane %v4312_v10, %v3660_v58  ;;  %v4317_v41 = vld [vmem:[#allocation34_spill] sm:$0xff]  ;;  %v4330_v10 = vld [vmem:[#allocation29_spill] sm:$0xff] }
 0x18f   : > { %v1235_v52 = vsel %vm1151_vm12, %v1234_v7, %v1230_v9  ;;  %v1312_v51 = vsel %vm1095_vm4, %v1311_v63, %v1307_v21  ;;  %v1341_v37 = vrot.slane %v4313_v34, %v3664_v17  ;;  %v1346_v30 = vrot.slane %v4314_v61, %v3667_v14  ;;  %v4326_v2 = vld [vmem:[#allocation30_spill] sm:$0xff] }
 0x190   : > { %v1240_v29 = vsel %vm1158_vm13, %v1239_v4, %v1235_v52  ;;  %v1317_v36 = vsel %vm1102_vm5, %v1316_v8, %v1312_v51  ;;  %v1366_v60 = vrot.slane %v4315_v25, %v3596_v6  ;;  %v1370_v38 = vrot.slane %v4316_v39, %v3608_v26  ;;  %v4319_v6 = vld [vmem:[#allocation36_spill] sm:$0xff]  ;;  %v4320_v4 = vld [vmem:[#allocation35_spill] sm:$0xff] }
 0x191   : > { %v1245_v56 = vsel %vm1165_vm14, %v1244_v49, %v1240_v29  ;;  %v1322_v62 = vsel %vm1109_vm6, %v1321_v46, %v1317_v36  ;;  %v1375_v7 = vrot.slane %v4317_v41, %v3611_v54  ;;  %v1380_v1 = vrot.slane %v4318_v40, %v3614_v0  ;;  %v4321_v54 = vld [vmem:[#allocation38_spill] sm:$0xff]  ;;  %v4325_v8 = vld [vmem:[#allocation39_spill] sm:$0xff] }
 0x192   : > { %v1247_v32 = vsel %vm1246_vm15, %v1245_v56, %v1166_v15  ;;  %v1327_v42 = vsel %vm1116_vm7, %v1326_v33, %v1322_v62  ;;  %v1371_v16 = vsel %vm1067_vm0, %v1370_v38, %v1366_v60  ;;  %v1385_v53 = vrot.slane %v4319_v6, %v3617_v18  ;;  %v4323_v18 = vld [vmem:[#allocation37_spill] sm:$0xff]  ;;  %v4331_v29 = vld [vmem:[#allocation43_spill] sm:$0xff] }
 0x193   : > { %v1249_v43 = vmax.f32 %v1023_v35, %v1247_v32  ;;  %v1332_v26 = vsel %vm1123_vm8, %v1331_v31, %v1327_v42  ;;  %v1376_v15 = vsel %vm1074_vm1, %v1375_v7, %v1371_v16  ;;  %v1390_v45 = vrot.slane %v4320_v4, %v3620_v57  ;;  %v4324_v57 = vld [vmem:[#allocation40_spill] sm:$0xff]  ;;  %v1251_v60 = vld [vmem:[#allocation3] sm:$0x3] }
 0x194   : > { %v1395_v20 = vrot.slane %v4321_v54, %v3623_v50  ;;  %v1337_v0 = vsel %vm1130_vm9, %v1336_v55, %v1332_v26  ;;  %v1351_v13 = vrot.slane %v4322_v44, %v3670_v19  ;;  %v1381_v27 = vsel %vm1081_vm2, %v1380_v1, %v1376_v15  ;;  %v4329_v31 = vld [vmem:[#allocation44_spill] sm:$0xff] }
 0x195   : > { %1250 = vst [vmem:[#allocation2] sm:$0x3] %v1249_v43  ;;  %v1400_v49 = vrot.slane %v4323_v18, %v3626_v12  ;;  %v1342_v48 = vsel %vm1137_vm10, %v1341_v37, %v1337_v0  ;;  %v1386_v63 = vsel %vm1088_vm3, %v1385_v53, %v1381_v27  ;;  %v1405_v5 = vrot.slane %v4324_v57, %v3645_v59  ;;  %v4327_v12 = vld [vmem:[#allocation42_spill] sm:$0xff]  ;;  %v4328_v59 = vld [vmem:[#allocation41_spill] sm:$0xff] }
 0x196   : > { %v1347_v50 = vsel %vm1144_vm11, %v1346_v30, %v1342_v48  ;;  %v1391_v47 = vsel %vm1095_vm4, %v1390_v45, %v1386_v63  ;;  %v1410_v9 = vrot.slane %v4325_v8, %v3657_v22  ;;  %v1356_v11 = vrot.slane %v4326_v2, %v3687_v24  ;;  %v4332_v37 = vld [vmem:[#allocation46_spill] sm:$0xff]  ;;  %v4333_v30 = vld [vmem:[#allocation45_spill] sm:$0xff] }
 0x197   : > { %v1396_v46 = vsel %vm1102_vm5, %v1395_v20, %v1391_v47  ;;  %v1415_v23 = vrot.slane %v4327_v12, %v3660_v58  ;;  %v1352_v33 = vsel %vm1151_vm12, %v1351_v13, %v1347_v50  ;;  %v1420_v21 = vrot.slane %v4328_v59, %v3664_v17 }
 0x198   : > { %v1401_v52 = vsel %vm1109_vm6, %v1400_v49, %v1396_v46  ;;  %v1425_v22 = vrot.slane %v4329_v31, %v3667_v14  ;;  %v1361_v55 = vrot.slane %v4330_v10, %v3699_v28  ;;  %v1430_v58 = vrot.slane %v4331_v29, %v3670_v19 }
 0x199   : > { %v1406_v3 = vsel %vm1116_vm7, %v1405_v5, %v1401_v52  ;;  %v1357_v51 = vsel %vm1158_vm13, %v1356_v11, %v1352_v33  ;;  %v1435_v17 = vrot.slane %v4332_v37, %v3687_v24  ;;  %v1440_v14 = vrot.slane %v4333_v30, %v3699_v28 }
 0x19a   : > { %v1411_v35 = vsel %vm1123_vm8, %v1410_v9, %v1406_v3  ;;  %v1362_v36 = vsel %vm1165_vm14, %v1361_v55, %v1357_v51 }
 0x19b   : > { %v1416_v34 = vsel %vm1130_vm9, %v1415_v23, %v1411_v35 }
 0x19c   : > { %v1421_v61 = vsel %vm1137_vm10, %v1420_v21, %v1416_v34 }
 0x19d   : > { %v1426_v56 = vsel %vm1144_vm11, %v1425_v22, %v1421_v61 }
 0x19e   : > { %v1431_v25 = vsel %vm1151_vm12, %v1430_v58, %v1426_v56 }
 0x19f   : > { %v1436_v19 = vsel %vm1158_vm13, %v1435_v17, %v1431_v25 }
 0x1a0   : > { %v1441_v39 = vsel %vm1165_vm14, %v1440_v14, %v1436_v19 }
 0x1a1   : > { %v1442_v38 = vsel %vm1246_vm15, %v1441_v39, %v1362_v36 }
 0x1a2   : > { %v1444_v32 = vadd.f32 %v1442_v38, %v1251_v60 }
 0x1a4   : > { %1445 = vst [vmem:[#allocation3] sm:$0x3] %v1444_v32 }
 0x1a5 PF: > { %p2501_p10 = scmp.ne.s32.totalorder %s3017_s24, 1 }
 0x1a6   : > { %v2758_v24 = vld [vmem:[%s4212_s2 + $0x4] ss:$16 sps:$4 sm:$0xff] (!%p2501_p10)   ;;  %v2760_v28 = vld [vmem:[%s4212_s2 + $0xc] ss:$16 sps:$4 sm:$0xff] (!%p2501_p10)   ;;  %v2964_v62 = vmov (!%p2501_p10), 0  }
 0x1a7   : > { %1449 = sbr.rel (%p2501_p10) target bundleno = 974 (0x3ce), region = 97  ;;  %1710 = vmatprep.mubr.bf16.mxu0 (!%p2501_p10), %v2964_v62  ;;  %1751 = vmatprep.mubr.bf16.mxu1 (!%p2501_p10), %v2964_v62  ;;  %v2762_v41 = vld [vmem:[%s4212_s2] ss:$16 sps:$4 sm:$0xff] (!%p2501_p10)   ;;  %v2763_v7 = vld [vmem:[%s4212_s2 + $0x8] ss:$16 sps:$4 sm:$0xff] (!%p2501_p10)  }
 0x1a8   : > { %1678 = vmatprep.subr.bf16.mxu0 (!%p2501_p10), %v2758_v24  ;;  %1719 = vmatprep.subr.bf16.mxu1 (!%p2501_p10), %v2760_v28  ;;  %v2764_v40 = vld [vmem:[%s4212_s2 + $0x24] ss:$16 sps:$4 sm:$0xff] (!%p2501_p10)   ;;  %v2766_v1 = vld [vmem:[%s4212_s2 + $0x2c] ss:$16 sps:$4 sm:$0xff] (!%p2501_p10)   ;;  %v2768_v43 = vld [vmem:[%s4212_s2 + $0x20] ss:$16 sps:$4 sm:$0xff] (!%p2501_p10)  }
 0x1a9   : > { %1679 = vmatpush1.bf16.msra.mxu0 (!%p2501_p10), %v2762_v41  ;;  %1720 = vmatpush1.bf16.msra.mxu1 (!%p2501_p10), %v2763_v7  ;;  %v2769_v42 = vld [vmem:[%s4212_s2 + $0x28] ss:$16 sps:$4 sm:$0xff] (!%p2501_p10)   ;;  %v2770_v16 = vld [vmem:[%s4212_s2 + $0x44] ss:$16 sps:$4 sm:$0xff] (!%p2501_p10)   ;;  %v2772_v6 = vld [vmem:[%s4212_s2 + $0x4c] ss:$16 sps:$4 sm:$0xff] (!%p2501_p10)  }
 0x1aa   : > { %1680 = vmatprep.subr.bf16.mxu0 (!%p2501_p10), %v2764_v40  ;;  %1721 = vmatprep.subr.bf16.mxu1 (!%p2501_p10), %v2766_v1  ;;  %v2774_v53 = vld [vmem:[%s4212_s2 + $0x40] ss:$16 sps:$4 sm:$0xff] (!%p2501_p10)   ;;  %v2775_v26 = vld [vmem:[%s4212_s2 + $0x48] ss:$16 sps:$4 sm:$0xff] (!%p2501_p10)   ;;  %v2776_v15 = vld [vmem:[%s4212_s2 + $0x64] ss:$16 sps:$4 sm:$0xff] (!%p2501_p10)  }
 0x1ab   : > { %v2778_v4 = vld [vmem:[%s4212_s2 + $0x6c] ss:$16 sps:$4 sm:$0xff] (!%p2501_p10)   ;;  %v2780_v45 = vld [vmem:[%s4212_s2 + $0x60] ss:$16 sps:$4 sm:$0xff] (!%p2501_p10)   ;;  %v2781_v54 = vld [vmem:[%s4212_s2 + $0x68] ss:$16 sps:$4 sm:$0xff] (!%p2501_p10)  }
 0x1ac   : > { %v2782_v20 = vld [vmem:[%s4212_s2 + $0x84] ss:$16 sps:$4 sm:$0xff] (!%p2501_p10)   ;;  %v2784_v0 = vld [vmem:[%s4212_s2 + $0x8c] ss:$16 sps:$4 sm:$0xff] (!%p2501_p10)   ;;  %v2786_v44 = vld [vmem:[%s4212_s2 + $0x80] ss:$16 sps:$4 sm:$0xff] (!%p2501_p10)  }
 0x1ad   : > { %1681 = vmatpush1.bf16.msra.mxu0 (!%p2501_p10), %v2768_v43  ;;  %1722 = vmatpush1.bf16.msra.mxu1 (!%p2501_p10), %v2769_v42  ;;  %v2787_v13 = vld [vmem:[%s4212_s2 + $0x88] ss:$16 sps:$4 sm:$0xff] (!%p2501_p10)   ;;  %v2788_v27 = vld [vmem:[%s4212_s2 + $0xa4] ss:$16 sps:$4 sm:$0xff] (!%p2501_p10)   ;;  %v2790_v18 = vld [vmem:[%s4212_s2 + $0xac] ss:$16 sps:$4 sm:$0xff] (!%p2501_p10)  }
 0x1ae   : > { %1682 = vmatprep.subr.bf16.mxu0 %v2770_v16  ;;  %1723 = vmatprep.subr.bf16.mxu1 %v2772_v6  ;;  %v2792_v49 = vld [vmem:[%s4212_s2 + $0xa0] ss:$16 sps:$4 sm:$0xff]   ;;  %v2793_v48 = vld [vmem:[%s4212_s2 + $0xa8] ss:$16 sps:$4 sm:$0xff]   ;;  %v2794_v63 = vld [vmem:[%s4212_s2 + $0xc4] ss:$16 sps:$4 sm:$0xff]  }
 0x1af   : > { %v2796_v57 = vld [vmem:[%s4212_s2 + $0xcc] ss:$16 sps:$4 sm:$0xff]   ;;  %v2798_v5 = vld [vmem:[%s4212_s2 + $0xc0] ss:$16 sps:$4 sm:$0xff]   ;;  %v2799_v50 = vld [vmem:[%s4212_s2 + $0xc8] ss:$16 sps:$4 sm:$0xff]  }
 0x1b0   : > { %v2800_v47 = vld [vmem:[%s4212_s2 + $0xe4] ss:$16 sps:$4 sm:$0xff]   ;;  %v2802_v8 = vld [vmem:[%s4212_s2 + $0xec] ss:$16 sps:$4 sm:$0xff]   ;;  %v2804_v9 = vld [vmem:[%s4212_s2 + $0xe0] ss:$16 sps:$4 sm:$0xff]  }
 0x1b1   : > { %1683 = vmatpush1.bf16.msra.mxu0 %v2774_v53  ;;  %1724 = vmatpush1.bf16.msra.mxu1 %v2775_v26  ;;  %v2805_v2 = vld [vmem:[%s4212_s2 + $0xe8] ss:$16 sps:$4 sm:$0xff]   ;;  %v1452_v11 = vld [vmem:[#allocation3] sm:$0x3]  ;;  %v2808_v46 = vld [vmem:[%s4211_s1 + $0x4] ss:$16 sps:$4 sm:$0xff]  }
 0x1b2   : > { %1684 = vmatprep.subr.bf16.mxu0 %v2776_v15  ;;  %1725 = vmatprep.subr.bf16.mxu1 %v2778_v4  ;;  %v2811_v12 = vld [vmem:[%s4211_s1 + $0xc] ss:$16 sps:$4 sm:$0xff]   ;;  %v1453_v23 = vpack.c.bf16 %v1452_v11, %v1452_v11  ;;  %v2806_v33 = vld [vmem:[%s4211_s1] ss:$16 sps:$4 sm:$0xff]   ;;  %v2809_v52 = vld [vmem:[%s4211_s1 + $0x8] ss:$16 sps:$4 sm:$0xff]  }
 0x1b3   : > { %v2814_v59 = vld [vmem:[%s4211_s1 + $0x24] ss:$16 sps:$4 sm:$0xff]   ;;  %v2817_v21 = vld [vmem:[%s4211_s1 + $0x2c] ss:$16 sps:$4 sm:$0xff]   ;;  %v2812_v3 = vld [vmem:[%s4211_s1 + $0x20] ss:$16 sps:$4 sm:$0xff]  }
 0x1b4   : > { %v2815_v31 = vld [vmem:[%s4211_s1 + $0x28] ss:$16 sps:$4 sm:$0xff]   ;;  %v2820_v22 = vld [vmem:[%s4211_s1 + $0x44] ss:$16 sps:$4 sm:$0xff]   ;;  %v2823_v10 = vld [vmem:[%s4211_s1 + $0x4c] ss:$16 sps:$4 sm:$0xff]  }
 0x1b5   : > { %1685 = vmatpush1.bf16.msra.mxu0 %v2780_v45  ;;  %1726 = vmatpush1.bf16.msra.mxu1 %v2781_v54  ;;  %v2818_v55 = vld [vmem:[%s4211_s1 + $0x40] ss:$16 sps:$4 sm:$0xff]   ;;  %v2821_v35 = vld [vmem:[%s4211_s1 + $0x48] ss:$16 sps:$4 sm:$0xff]   ;;  %v2826_v29 = vld [vmem:[%s4211_s1 + $0x64] ss:$16 sps:$4 sm:$0xff]  }
 0x1b6   : > { %1686 = vmatprep.subr.bf16.mxu0 %v2782_v20  ;;  %1727 = vmatprep.subr.bf16.mxu1 %v2784_v0  ;;  %v2829_v58 = vld [vmem:[%s4211_s1 + $0x6c] ss:$16 sps:$4 sm:$0xff]   ;;  %v2824_v51 = vld [vmem:[%s4211_s1 + $0x60] ss:$16 sps:$4 sm:$0xff]   ;;  %v2827_v34 = vld [vmem:[%s4211_s1 + $0x68] ss:$16 sps:$4 sm:$0xff]  }
 0x1b7   : > { %v2832_v37 = vld [vmem:[%s4211_s1 + $0x84] ss:$16 sps:$4 sm:$0xff]   ;;  %v2835_v17 = vld [vmem:[%s4211_s1 + $0x8c] ss:$16 sps:$4 sm:$0xff]   ;;  %v2830_v61 = vld [vmem:[%s4211_s1 + $0x80] ss:$16 sps:$4 sm:$0xff]  }
 0x1b8   : > { %v2833_v30 = vld [vmem:[%s4211_s1 + $0x88] ss:$16 sps:$4 sm:$0xff]   ;;  %v2838_v14 = vld [vmem:[%s4211_s1 + $0xa4] ss:$16 sps:$4 sm:$0xff]   ;;  %v2841_v56 = vld [vmem:[%s4211_s1 + $0xac] ss:$16 sps:$4 sm:$0xff]  }
 0x1b9   : > { %1687 = vmatpush1.bf16.msra.mxu0 %v2786_v44  ;;  %1728 = vmatpush1.bf16.msra.mxu1 %v2787_v13  ;;  %v2836_v36 = vld [vmem:[%s4211_s1 + $0xa0] ss:$16 sps:$4 sm:$0xff]   ;;  %v2839_v25 = vld [vmem:[%s4211_s1 + $0xa8] ss:$16 sps:$4 sm:$0xff]   ;;  %v2844_v60 = vld [vmem:[%s4211_s1 + $0xc4] ss:$16 sps:$4 sm:$0xff]  }
 0x1ba   : > { %1688 = vmatprep.subr.bf16.mxu0 %v2788_v27  ;;  %1729 = vmatprep.subr.bf16.mxu1 %v2790_v18  ;;  %v2847_v19 = vld [vmem:[%s4211_s1 + $0xcc] ss:$16 sps:$4 sm:$0xff]   ;;  %v2842_v39 = vld [vmem:[%s4211_s1 + $0xc0] ss:$16 sps:$4 sm:$0xff]   ;;  %v2845_v38 = vld [vmem:[%s4211_s1 + $0xc8] ss:$16 sps:$4 sm:$0xff]  }
 0x1bb   : > { %v2850_v32 = vld [vmem:[%s4211_s1 + $0xe4] ss:$16 sps:$4 sm:$0xff]   ;;  %v2853_v24 = vld [vmem:[%s4211_s1 + $0xec] ss:$16 sps:$4 sm:$0xff]   ;;  %v2848_v28 = vld [vmem:[%s4211_s1 + $0xe0] ss:$16 sps:$4 sm:$0xff]  }
 0x1bc   : > { %v1450_v41 = vld [vmem:[#allocation2] sm:$0x3]  ;;  %v2858_v16 = vld [vmem:[%s4214_s4 + $0x48] sm:$0xff]   ;;  %v2862_v15 = vld [vmem:[%s4214_s4 + $0x50] sm:$0xff]  }
 0x1bd   : > { %1689 = vmatpush1.bf16.msra.mxu0 %v2792_v49  ;;  %1730 = vmatpush1.bf16.msra.mxu1 %v2793_v48  ;;  %v1451_v7 = vpack.c.bf16 %v1450_v41, %v1450_v41  ;;  %v2854_v40 = vld [vmem:[%s4214_s4 + $0x40] sm:$0xff]   ;;  %v2859_v6 = vld [vmem:[%s4214_s4 + $0xc8] sm:$0xff]   ;;  %v2863_v4 = vld [vmem:[%s4214_s4 + $0xd0] sm:$0xff]  }
 0x1be   : > { %1690 = vmatprep.subr.bf16.mxu0 %v2794_v63  ;;  %1731 = vmatprep.subr.bf16.mxu1 %v2796_v57  ;;  %v2855_v1 = vld [vmem:[%s4214_s4 + $0xc0] sm:$0xff]   ;;  %v2860_v53 = vld [vmem:[%s4214_s4 + $0x8] sm:$0xff]   ;;  %v2864_v45 = vld [vmem:[%s4214_s4 + $0x10] sm:$0xff]  }
 0x1bf   : > { %v2856_v43 = vld [vmem:[%s4214_s4] sm:$0xff]   ;;  %v2861_v26 = vld [vmem:[%s4214_s4 + $0x88] sm:$0xff]   ;;  %v2865_v54 = vld [vmem:[%s4214_s4 + $0x90] sm:$0xff]  }
 0x1c0   : > { %v2857_v42 = vld [vmem:[%s4214_s4 + $0x80] sm:$0xff]   ;;  %v2866_v20 = vld [vmem:[%s4214_s4 + $0x58] sm:$0xff]   ;;  %v2874_v63 = vld [vmem:[%s4214_s4 + $0x68] sm:$0xff]  }
 0x1c1   : > { %1691 = vmatpush1.bf16.msra.mxu0 %v2798_v5  ;;  %1732 = vmatpush1.bf16.msra.mxu1 %v2799_v50  ;;  %v2867_v0 = vld [vmem:[%s4214_s4 + $0xd8] sm:$0xff]   ;;  %v2870_v27 = vld [vmem:[%s4214_s4 + $0x60] sm:$0xff]   ;;  %v2875_v57 = vld [vmem:[%s4214_s4 + $0xe8] sm:$0xff]  }
 0x1c2   : > { %1692 = vmatprep.subr.bf16.mxu0 %v2800_v47  ;;  %1733 = vmatprep.subr.bf16.mxu1 %v2802_v8  ;;  %v2868_v44 = vld [vmem:[%s4214_s4 + $0x18] sm:$0xff]   ;;  %v2871_v18 = vld [vmem:[%s4214_s4 + $0xe0] sm:$0xff]   ;;  %v2876_v5 = vld [vmem:[%s4214_s4 + $0x28] sm:$0xff]  }
 0x1c3   : > { %v2869_v13 = vld [vmem:[%s4214_s4 + $0x98] sm:$0xff]   ;;  %v2872_v49 = vld [vmem:[%s4214_s4 + $0x20] sm:$0xff]   ;;  %v2877_v50 = vld [vmem:[%s4214_s4 + $0xa8] sm:$0xff]  }
 0x1c4   : > { %v2873_v48 = vld [vmem:[%s4214_s4 + $0xa0] sm:$0xff]   ;;  %v2878_v47 = vld [vmem:[%s4214_s4 + $0x70] sm:$0xff]   ;;  %v2882_v11 = vld [vmem:[%s4214_s4 + $0x78] sm:$0xff]  }
 0x1c5   : > { %1693 = vmatpush1.bf16.msra.mxu0 %v2804_v9  ;;  %1734 = vmatpush1.bf16.msra.mxu1 %v2805_v2  ;;  %v2879_v8 = vld [vmem:[%s4214_s4 + $0xf0] sm:$0xff]  }
 0x1c6   : > { %1920 = vmatprep.subr.bf16.mxu0 %v2808_v46  ;;  %1961 = vmatprep.subr.bf16.mxu1 %v2811_v12  ;;  %v2880_v9 = vld [vmem:[%s4214_s4 + $0x30] sm:$0xff]   ;;  %v2883_v46 = vld [vmem:[%s4214_s4 + $0xf8] sm:$0xff]  }
 0x1c7   : > { %v2881_v2 = vld [vmem:[%s4214_s4 + $0xb0] sm:$0xff]   ;;  %v2884_v12 = vld [vmem:[%s4214_s4 + $0x38] sm:$0xff]  }
 0x1c8   : > { %1711 = vmatmul.mubr.bf16.vlgmr.msra.gmra.mrb[0].mxu0 %v1453_v23  ;;  %1752 = vmatmul.mubr.bf16.vlgmr.msra.gmra.mrb[0].mxu1 %v1453_v23  ;;  %v2885_v23 = vld [vmem:[%s4214_s4 + $0xb8] sm:$0xff]  }
 0x1c9   : > { %1921 = vmatpush1.bf16.msra.mxu0 %v2806_v33  ;;  %1962 = vmatpush1.bf16.msra.mxu1 %v2809_v52 }
 0x1ca   : > { %1922 = vmatprep.subr.bf16.mxu0 %v2814_v59  ;;  %1963 = vmatprep.subr.bf16.mxu1 %v2817_v21 }
 0x1cb   : > { %1952 = vmatprep.mubr.bf16.mxu0 %v2964_v62  ;;  %1993 = vmatprep.mubr.bf16.mxu1 %v2964_v62  ;;  %v2851_v62 = vld [vmem:[%s4211_s1 + $0xe8] ss:$16 sps:$4 sm:$0xff]  }
 0x1cd   : > { %1923 = vmatpush1.bf16.msra.mxu0 %v2812_v3  ;;  %1964 = vmatpush1.bf16.msra.mxu1 %v2815_v31 }
 0x1ce   : > { %1924 = vmatprep.subr.bf16.mxu0 %v2820_v22  ;;  %1965 = vmatprep.subr.bf16.mxu1 %v2823_v10 }
 0x1d1   : > { %1925 = vmatpush1.bf16.msra.mxu0 %v2818_v55  ;;  %1966 = vmatpush1.bf16.msra.mxu1 %v2821_v35  ;;  %v2004_v55 = vlaneseq }
 0x1d2   : > { %1926 = vmatprep.subr.bf16.mxu0 %v2826_v29  ;;  %1967 = vmatprep.subr.bf16.mxu1 %v2829_v58 }
 0x1d3   : > { %v2005_v35 = vshrl.u32 %v2004_v55, 7 }
 0x1d5   : > { %1927 = vmatpush1.bf16.msra.mxu0 %v2824_v51  ;;  %1968 = vmatpush1.bf16.msra.mxu1 %v2827_v34  ;;  %v2006_v29 = vsub.s32 0, %v2005_v35  ;;  %v2014_v58 = vsub.s32 2, %v2005_v35  ;;  %v2002_v51 = vld [vmem:[%s4213_s3] sm:$0xf]  ;;  %v2010_v34 = vsub.s32 1, %v2005_v35 }
 0x1d6   : > { %1928 = vmatprep.subr.bf16.mxu0 %v2832_v37  ;;  %1969 = vmatprep.subr.bf16.mxu1 %v2835_v17  ;;  %v2018_v37 = vsub.s32 3, %v2005_v35 }
 0x1d7   : > { %v2007_v17 = vrot.slane %v2002_v51, %v2006_v29 }
 0x1d9   : > { %1929 = vmatpush1.bf16.msra.mxu0 %v2830_v61  ;;  %1970 = vmatpush1.bf16.msra.mxu1 %v2833_v30  ;;  %v2015_v61 = vrot.slane %v2002_v51, %v2014_v58 }
 0x1da   : > { %1930 = vmatprep.subr.bf16.mxu0 %v2838_v14  ;;  %1971 = vmatprep.subr.bf16.mxu1 %v2841_v56  ;;  %v2011_v56 = vrot.slane %v2002_v51, %v2010_v34 }
 0x1dd   : > { %1931 = vmatpush1.bf16.msra.mxu0 %v2836_v36  ;;  %1972 = vmatpush1.bf16.msra.mxu1 %v2839_v25  ;;  %v2019_v36 = vrot.slane %v2002_v51, %v2018_v37 }
 0x1de   : > { %1932 = vmatprep.subr.bf16.mxu0 %v2844_v60  ;;  %1973 = vmatprep.subr.bf16.mxu1 %v2847_v19 }
 0x1e1   : > { %1933 = vmatpush1.bf16.msra.mxu0 %v2842_v39  ;;  %1974 = vmatpush1.bf16.msra.mxu1 %v2845_v38 }
 0x1e2   : > { %1934 = vmatprep.subr.bf16.mxu0 %v2850_v32  ;;  %1975 = vmatprep.subr.bf16.mxu1 %v2853_v24 }
 0x1e5   : > { %1935 = vmatpush1.bf16.msra.mxu0 %v2848_v28  ;;  %1976 = vmatpush1.bf16.msra.mxu1 %v2851_v62 }
 0x1e6   : > { %2682 = vmatprep.subr.bf16.mxu0 %v2854_v40  ;;  %2704 = vmatprep.subr.bf16.mxu1 %v2855_v1 }
 0x1e8   : > { %1953 = vmatmul.mubr.bf16.vlgmr.msra.gmra.mrb[4].mxu0 %v1451_v7  ;;  %1994 = vmatmul.mubr.bf16.vlgmr.msra.gmra.mrb[4].mxu1 %v1451_v7 }
 0x1e9   : > { %2683 = vmatpush3.bf16.msra.mxu0 %v2856_v43  ;;  %2705 = vmatpush3.bf16.msra.mxu1 %v2857_v42 }
 0x1ea   : > { %2684 = vmatprep.subr.bf16.mxu0 %v2858_v16  ;;  %2706 = vmatprep.subr.bf16.mxu1 %v2859_v6 }
 0x1ed   : > { %2685 = vmatpush3.bf16.msra.mxu0 %v2860_v53  ;;  %2707 = vmatpush3.bf16.msra.mxu1 %v2861_v26 }
 0x1ee   : > { %2686 = vmatprep.subr.bf16.mxu0 %v2862_v15  ;;  %2708 = vmatprep.subr.bf16.mxu1 %v2863_v4 }
 0x1f1   : > { %2687 = vmatpush3.bf16.msra.mxu0 %v2864_v45  ;;  %2709 = vmatpush3.bf16.msra.mxu1 %v2865_v54 }
 0x1f2   : > { %2688 = vmatprep.subr.bf16.mxu0 %v2866_v20  ;;  %2710 = vmatprep.subr.bf16.mxu1 %v2867_v0 }
 0x1f5   : > { %2689 = vmatpush3.bf16.msra.mxu0 %v2868_v44  ;;  %2711 = vmatpush3.bf16.msra.mxu1 %v2869_v13 }
 0x1f6   : > { %2690 = vmatprep.subr.bf16.mxu0 %v2870_v27  ;;  %2712 = vmatprep.subr.bf16.mxu1 %v2871_v18 }
 0x1f9   : > { %2691 = vmatpush3.bf16.msra.mxu0 %v2872_v49  ;;  %2713 = vmatpush3.bf16.msra.mxu1 %v2873_v48 }
 0x1fa   : > { %2692 = vmatprep.subr.bf16.mxu0 %v2874_v63  ;;  %2714 = vmatprep.subr.bf16.mxu1 %v2875_v57 }
 0x1fd   : > { %2693 = vmatpush3.bf16.msra.mxu0 %v2876_v5  ;;  %2715 = vmatpush3.bf16.msra.mxu1 %v2877_v50 }
 0x1fe   : > { %2694 = vmatprep.subr.bf16.mxu0 %v2878_v47  ;;  %2716 = vmatprep.subr.bf16.mxu1 %v2879_v8 }
 0x201   : > { %2695 = vmatpush3.bf16.msra.mxu0 %v2880_v9  ;;  %2717 = vmatpush3.bf16.msra.mxu1 %v2881_v2 }
 0x202   : > { %2696 = vmatprep.subr.bf16.mxu0 %v2882_v11  ;;  %2718 = vmatprep.subr.bf16.mxu1 %v2883_v46 }
 0x205   : > { %2697 = vmatpush3.bf16.msra.mxu0 %v2884_v12  ;;  %2719 = vmatpush3.bf16.msra.mxu1 %v2885_v23 }
 0x29b   : > { %v1712_v33 = vpop.f32.mrb[0].mxu0  ;;  %v1753_v52 = vpop.f32.mrb[0].mxu1 }
 0x29c   : > { %v1714_v59 = vpop.f32.mrb[1].mxu0  ;;  %v1755_v21 = vpop.f32.mrb[1].mxu1 }
 0x29d   : > { %v1716_v3 = vpop.f32.mrb[2].mxu0  ;;  %v1757_v31 = vpop.f32.mrb[2].mxu1 }
 0x29e   : > { %v1717_v22 = vpop.f32.mrb[3].mxu0  ;;  %v1758_v10 = vpop.f32.mrb[3].mxu1 }
 0x2bb   : > { %v1954_v30 = vpop.f32.mrb[4].mxu0  ;;  %v1995_v14 = vpop.f32.mrb[4].mxu1 }
 0x2bc   : > { %v1955_v25 = vadd.f32 %v1954_v30, %v1712_v33  ;;  %v1996_v60 = vadd.f32 %v1995_v14, %v1753_v52  ;;  %v1956_v19 = vpop.f32.mrb[5].mxu0  ;;  %v1997_v39 = vpop.f32.mrb[5].mxu1 }
 0x2bd   : > { %v1957_v38 = vadd.f32 %v1956_v19, %v1714_v59  ;;  %v1998_v32 = vadd.f32 %v1997_v39, %v1755_v21  ;;  %v1958_v24 = vpop.f32.mrb[6].mxu0  ;;  %v1999_v28 = vpop.f32.mrb[6].mxu1 }
 0x2be   : > { %v4144_v62 = vadd.f32 %v2007_v17, %v1955_v25  ;;  %v4146_v41 = vadd.f32 %v2015_v61, %v1996_v60  ;;  %v1959_v7 = vpop.f32.mrb[7].mxu0  ;;  %v2000_v40 = vpop.f32.mrb[7].mxu1 }
 0x2bf   : > { %v4148_v1 = vadd.f32 %v2011_v56, %v1957_v38  ;;  %v4150_v43 = vadd.f32 %v2019_v36, %v1998_v32 }
 0x2c0   : > { %v2032_v42 = vmin.f32 %v4144_v62, 20.0  ;;  %v2034_v16 = vmin.f32 %v4146_v41, 20.0  ;;  %vm2028_vm0 = vcmp.gt.f32.partialorder %v4144_v62, 20.0  ;;  %vm2030_vm1 = vcmp.gt.f32.partialorder %v4146_v41, 20.0 }
 0x2c1   : > { %v2033_v6 = vmin.f32 %v4148_v1, 20.0  ;;  %v2035_v53 = vmin.f32 %v4150_v43, 20.0  ;;  %vm2029_vm2 = vcmp.gt.f32.partialorder %v4148_v1, 20.0  ;;  %vm2031_vm7 = vcmp.gt.f32.partialorder %v4150_v43, 20.0 }
 0x2c2   : > { %v2036_v26 = vmul.f32 1.442695, %v2032_v42  ;;  %v2040_v15 = vmul.f32 1.442695, %v2034_v16 }
 0x2c3   : > { %v2038_v4 = vmul.f32 1.442695, %v2033_v6  ;;  %v2042_v45 = vmul.f32 1.442695, %v2035_v53 }
 0x2c4   : > { %2886 = vpow2.f32 %v2036_v26 }
 0x2c5   : > { %2888 = vpow2.f32 %v2040_v15 }
 0x2c6   : > { %2890 = vpow2.f32 %v2038_v4 }
 0x2c7   : > { %2892 = vpow2.f32 %v2042_v45 }
 0x2ce   : > { %v2887_v54 = vpop.eup %2886 }
 0x2cf   : > { %v2889_v20 = vpop.eup %2888  ;;  %v2044_v0 = vadd.f32 1.0, %v2887_v54  ;;  %v2047_v48 = vmul.f32 -0.5, %v2887_v54  ;;  %v2050_v47 = vand.u32 2147483647, %v2887_v54 }
 0x2d0   : > { %v2891_v44 = vpop.eup %2890  ;;  %v2062_v13 = vadd.f32 1.0, %v2889_v20  ;;  %v2065_v63 = vmul.f32 -0.5, %v2889_v20  ;;  %v2068_v9 = vand.u32 2147483647, %v2889_v20 }
 0x2d1   : > { %v2893_v27 = vpop.eup %2892  ;;  %2894 = vlog2.f32 %v2044_v0  ;;  %v2053_v18 = vadd.f32 1.0, %v2891_v44  ;;  %v2056_v57 = vmul.f32 -0.5, %v2891_v44  ;;  %v2048_v50 = vadd.f32 1.0, %v2047_v48 }
 0x2d2   : > { %2896 = vlog2.f32 %v2062_v13  ;;  %v2071_v49 = vadd.f32 1.0, %v2893_v27  ;;  %v2074_v5 = vmul.f32 -0.5, %v2893_v27  ;;  %v2066_v8 = vadd.f32 1.0, %v2065_v63 }
 0x2d3   : > { %2898 = vlog2.f32 %v2053_v18  ;;  %v2057_v2 = vadd.f32 1.0, %v2056_v57  ;;  %v2059_v46 = vand.u32 2147483647, %v2891_v44  ;;  %v2049_v52 = vmul.f32 %v2887_v54, %v2048_v50 }
 0x2d4   : > { %2900 = vlog2.f32 %v2071_v49  ;;  %v2075_v12 = vadd.f32 1.0, %v2074_v5  ;;  %vm2051_vm3 = vcmp.lt.f32.partialorder %v2050_v47, 0.0004427343  ;;  %v2067_v3 = vmul.f32 %v2889_v20, %v2066_v8 }
 0x2d5   : > { %v2077_v31 = vand.u32 2147483647, %v2893_v27  ;;  %vm2069_vm4 = vcmp.lt.f32.partialorder %v2068_v9, 0.0004427343  ;;  %v2058_v55 = vmul.f32 %v2891_v44, %v2057_v2  ;;  %vm2060_vm5 = vcmp.lt.f32.partialorder %v2059_v46, 0.0004427343 }
 0x2d6   : > { %v2076_v51 = vmul.f32 %v2893_v27, %v2075_v12 }
 0x2d7   : > { %vm2078_vm6 = vcmp.lt.f32.partialorder %v2077_v31, 0.0004427343 }
 0x2db   : > { %v2895_v11 = vpop.eup %2894 }
 0x2dc   : > { %v2897_v23 = vpop.eup %2896  ;;  %v2046_v33 = vmul.f32 0.6931472, %v2895_v11 }
 0x2dd   : > { %v2899_v59 = vpop.eup %2898  ;;  %v2064_v21 = vmul.f32 0.6931472, %v2897_v23 }
 0x2de   : > { %v2052_v22 = vsel %vm2051_vm3, %v2049_v52, %v2046_v33  ;;  %v2055_v10 = vmul.f32 0.6931472, %v2899_v59  ;;  %v2901_v35 = vpop.eup %2900 }
 0x2df   : > { %v2080_v29 = vsel %vm2028_vm0, %v4144_v62, %v2052_v22  ;;  %v2070_v58 = vsel %vm2069_vm4, %v2067_v3, %v2064_v21  ;;  %v2073_v17 = vmul.f32 0.6931472, %v2901_v35 }
 0x2e0   : > { %2902 = vtanh.f32 %v2080_v29  ;;  %v2082_v34 = vsel %vm2030_vm1, %v4146_v41, %v2070_v58  ;;  %v2061_v37 = vsel %vm2060_vm5, %v2058_v55, %v2055_v10 }
 0x2e1   : > { %2904 = vtanh.f32 %v2082_v34  ;;  %v2081_v61 = vsel %vm2029_vm2, %v4148_v1, %v2061_v37  ;;  %v2079_v30 = vsel %vm2078_vm6, %v2076_v51, %v2073_v17 }
 0x2e2   : > { %2906 = vtanh.f32 %v2081_v61  ;;  %v2083_v14 = vsel %vm2031_vm7, %v4150_v43, %v2079_v30 }
 0x2e3   : > { %2908 = vtanh.f32 %v2083_v14 }
 0x2ea   : > { %v2903_v56 = vpop.eup %2902 }
 0x2eb   : > { %v2905_v36 = vpop.eup %2904  ;;  %v2088_v60 = vmul.f32 %v2903_v56, %v4144_v62  ;;  %v2566_v62 = vld [vmem:[%s4215_s5] ss:$0 sm:$0xff] }
 0x2ec   : > { %v2907_v25 = vpop.eup %2906  ;;  %v2090_v38 = vmul.f32 %v2905_v36, %v4146_v41 }
 0x2ed   : > { %v2089_v19 = vmul.f32 %v2907_v25, %v4148_v1  ;;  %v2909_v39 = vpop.eup %2908  ;;  %v2092_v28 = vpack.c.bf16 %v2088_v60, %v2088_v60 }
 0x2ee   : > { %v2091_v24 = vmul.f32 %v2909_v39, %v4150_v43  ;;  %v2094_v40 = vpack.c.bf16 %v2090_v38, %v2090_v38 }
 0x2ef   : > { %v2093_v32 = vpack.c.bf16 %v2089_v19, %v2089_v19 }
 0x2f0   : > { %v2095_v7 = vpack.c.bf16 %v2091_v24, %v2091_v24 }
 0x2f1   : > { %2391 = vmatprep.mubr.bf16.mxu0 %v2093_v32 }
 0x2f2   : > { %2392 = vmatmul.mubr.bf16.vlgmr.msra.gmra.mrb[8].mxu0 %v2092_v28  ;;  %2431 = vmatprep.mubr.bf16.mxu1 %v2095_v7 }
 0x2f3   : > { %2432 = vmatmul.mubr.bf16.vlgmr.msra.gmra.mrb[8].mxu1 %v2094_v40 }
 0x3c5   : > { %v2698_v42 = vpop.f32.mrb[8].mxu0 }
 0x3c6   : > { %v2699_v16 = vpop.f32.mrb[9].mxu0  ;;  %v2720_v1 = vpop.f32.mrb[8].mxu1 }
 0x3c7   : > { %v2700_v6 = vadd.f32 %v2699_v16, %v2698_v42  ;;  %v2701_v53 = vpop.f32.mrb[10].mxu0  ;;  %v2721_v41 = vpop.f32.mrb[9].mxu1 }
 0x3c8   : > { %v2702_v26 = vpop.f32.mrb[11].mxu0  ;;  %v2722_v43 = vadd.f32 %v2721_v41, %v2720_v1  ;;  %v2723_v4 = vpop.f32.mrb[10].mxu1 }
 0x3c9   : > { %v2394_v15 = vadd.f32 %v2700_v6, %v2566_v62  ;;  %v2724_v45 = vpop.f32.mrb[11].mxu1 }
 0x3cb   : > { %v2434_v54 = vadd.f32 %v2722_v43, %v2394_v15 }
 0x3cd   : > { %2439 = vst [vmem:[#allocation5] sm:$0x3] %v2434_v54 }
 0x3ce PF: > { %p2730_p11 = scmp.eq.s32.totalorder %s3017_s24, 1  ;;  %s2965_s11 = smov [#allocation5]  }
 0x3cf   : > { %s2447_s12 = sshll.u32 %s2965_s11, 4  ;;  %s2448_s12 = int_to_ptr.vmem [resolvable:$true] %s2447_s12 }
 0x3d0   : > { %s2910_s13 = scalar_lea.vmem %s2448_s12, 32  ;;  %p2917_p1 = scmp.lt.s32.totalorder %s2448_s12, %s2448_s12 }
 0x3d1   : > { %p2911_p12 = scmp.ne.s32.totalorder %s2448_s12, %s2910_s13  ;;  %p2918_p2 = scmp.lt.s32.totalorder %s2910_s13, %s2910_s13 }
 0x3d3   : > { %p2912_p13 = pnand %p2911_p12, %p2730_p11  ;;  %p2919_p3 = por %p2918_p2, %p2917_p1 }
 0x3d5   : > { %p2913_p0 = pneg %p2912_p13 }
 0x3d7   : > { %p2920_p4 = pnand %p2919_p3, %p2913_p0 }
 0x3d9   : > { %2923 = shalt.err (!%p2920_p4)
}
 0x3da   : > { %s2924_s16 = scalar_lea.hbm %s4216_s6, 32 }
 0x3db   : > { %p2925_p5 = scmp.ne.s32.totalorder %s4216_s6, %s2924_s16  ;;  %p2930_p8 = scmp.lt.u32.totalorder %s2924_s16, %s4216_s6 }
 0x3dd   : > { %p2926_p6 = pnand %p2925_p5, %p2730_p11 }
 0x3df   : > { %p2927_p7 = pneg %p2926_p6 }
 0x3e1   : > { %p2932_p9 = pnand %p2930_p8, %p2927_p7 }
 0x3e3   : > { %2935 = shalt.err (!%p2932_p9)
}
 0x3e4   : > { %2727 = dma.vmem_to_hbm [thread:$0]  (%p2730_p11), %s2448_s12, 32, %s4216_s6, [#allocation6]  }
 0x3e5   : > { %2949 = dma.done.wait (%p2730_p11), [#allocation6], 32  }
 0x3e6   : > { %2951 = vsyncadd (%p2730_p11), [#allocation6], 4294967264 }
 0x3e7 PF: > { %p14_p10 = scmp.ge.s32.totalorder %s3020_s25, 4   ;;  %s4334_s21 = smov %s2958_s22 }
 0x3e8   : > { %s4335_s22 = smov %s3029_s28  ;;  %s4336_s23 = smov %s3020_s25 }
 0x3e9   :  { %16 = sbr.rel (!%p14_p10) target bundleno = 2 (0x2), region = 129 }
 0x3f0   :  { %2460 = vsyncpa [#allocation6], 1 }
 0x3f1   :  { %2462 = vsyncpa [#allocation6 + $0x1], 1 }

</bundles_post_ra>
